<compile_context>
chip_gen: v7x
topology: tpu7x:2x2x1
jax: 0.10.0
libtpu: 0.0.40
codegen_flags: <defaults>
</compile_context>

<pallas_src>
import math

import jax
import jax.numpy as jnp
from jax.experimental import pallas as pl
from jax.experimental.pallas import tpu as pltpu  # noqa: F401  (TPU backend)

# ----------------------------- model config ---------------------------------
BATCH      = 2
SEQ        = 8
HID        = 32
NUM_HEADS  = 2
HEAD_DIM   = HID // NUM_HEADS
FFN        = 4 * HID
NUM_LAYERS = 2
VOCAB      = 100
MAX_POS    = 16
TYPE_VOCAB = 2
CTX_DIM    = 10
NUM_SLOTS  = 4
LN_EPS     = 1e-12

TOKENS = BATCH * SEQ            # flattened (B*S) rows for all projections
SLOTS  = BATCH * NUM_SLOTS      # flattened (B*NUM_SLOTS) rows for the head

# packed weight slab: [wq|wk|wv|wo|w1] along lanes, per layer
WA_LANES = 4 * HID + FFN        # 256

# packed vector slab (biases / LN params / head vectors), one row each
VEC_W = max(FFN, 128)           # 128 lanes per row
ROW_EMB_G, ROW_EMB_B, ROW_FF_B, ROW_V_W = 0, 1, 2, 3
ROW_LAYER0 = 4
ROWS_PER_LAYER = 8
R_BQKV, R_BO, R_G1, R_BE1, R_BI1, R_BI2, R_G2, R_BE2 = range(ROWS_PER_LAYER)
VEC_ROWS = ROW_LAYER0 + NUM_LAYERS * ROWS_PER_LAYER


# ----------------------------- small helpers --------------------------------
def _layer_norm(x, gamma, beta, eps=LN_EPS):
    mu = jnp.mean(x, axis=-1, keepdims=True)
    var = jnp.mean(jnp.square(x - mu), axis=-1, keepdims=True)
    return (x - mu) * jax.lax.rsqrt(var + eps) * gamma + beta


def _gelu(x):
    # TODO(synk): PyTorch/BERT GELU defaults to the erf form; tanh approximation
    # kept for robust Mosaic lowering (relative difference ~1e-3).
    return 0.5 * x * (1.0 + jnp.tanh(0.7978845608028654 * (x + 0.044715 * x * x * x)))


# ----------------------------- fused forward kernel -------------------------
def cat_slot_head_kernel(xin_ref, bias_ref, pmask_ref, wa_ref, w2_ref, vec_ref,
                         out_ref):
    f32 = jnp.float32

    def vrow(r, n=HID):                       # packed-vector row -> (1, n)
        return vec_ref[r:r + 1, 0:n]

    # ---- embeddings: LN(word+pos+tok) then LN(. + ctx_emb); dropout = identity
    emb_g, emb_b = vrow(ROW_EMB_G), vrow(ROW_EMB_B)
    x = _layer_norm(xin_ref[0], emb_g, emb_b)            # (TOKENS, HID)
    x = _layer_norm(x + xin_ref[1], emb_g, emb_b)

    bias = bias_ref[...]                                  # (TOKENS, TOKENS)
    scale = 1.0 / math.sqrt(HEAD_DIM)

    # ---- transformer encoder layers (static unrolled loop, packed weights) --
    for l in range(NUM_LAYERS):
        wa_l = wa_ref[l]                                  # (HID, 4*HID + FFN)
        r0 = ROW_LAYER0 + l * ROWS_PER_LAYER

        # fused QKV: one (16,32)x(32,96) matmul
        qkv = (jnp.dot(x, wa_l[:, :3 * HID], preferred_element_type=f32)
               + vrow(r0 + R_BQKV, 3 * HID))              # (TOKENS, 96)
        wo_l = wa_l[:, 3 * HID:4 * HID]                   # (HID, HID)

        attn = vrow(r0 + R_BO)                            # (1, HID), broadcasts
        for h in range(NUM_HEADS):                        # static, 2 iters
            sl = slice(h * HEAD_DIM, (h + 1) * HEAD_DIM)
            qh = qkv[:, h * HEAD_DIM:(h + 1) * HEAD_DIM]
            kh = qkv[:, HID + h * HEAD_DIM:HID + (h + 1) * HEAD_DIM]
            vh = qkv[:, 2 * HID + h * HEAD_DIM:2 * HID + (h + 1) * HEAD_DIM]

            # flattened-batch scores: block-diagonal additive mask handles batch
            s = jax.lax.dot_general(qh, kh, (((1,), (1,)), ((), ())),
                                    preferred_element_type=f32) * scale
            s = s + bias
            s = s - jnp.max(s, axis=-1, keepdims=True)
            p = jnp.exp(s)
            p = p * pl.reciprocal(jnp.sum(p, axis=-1, keepdims=True), approx=True)
            ctx_h = jnp.dot(p, vh, preferred_element_type=f32)   # (TOKENS, Dh)
            # accumulate through this head's row-block of W_o -> no lane concat
            attn = attn + jnp.dot(ctx_h, wo_l[sl, :],
                                  preferred_element_type=f32)    # (TOKENS, HID)

        x = _layer_norm(x + attn, vrow(r0 + R_G1), vrow(r0 + R_BE1))
        ff = _gelu(jnp.dot(x, wa_l[:, 4 * HID:], preferred_element_type=f32)
                   + vrow(r0 + R_BI1, FFN))
        ff = jnp.dot(ff, w2_ref[l], preferred_element_type=f32) + vrow(r0 + R_BI2)
        x = _layer_norm(x + ff, vrow(r0 + R_G2), vrow(r0 + R_BE2))

    # ---- span max-pool over flattened tokens (precomputed additive mask) ----
    pooled = jnp.max(x[None, :, :] + pmask_ref[...], axis=1)     # (SLOTS, HID)
    reps = jnp.where(pooled > -1e29, pooled, 0.0)                # span == -1 -> 0

    # ---- head: logits = v . tanh(ff(reps))  (VPU mul + lane-sum, no MXU) ----
    ffw = wa_ref[NUM_LAYERS][:, :HID]                            # (HID, HID)
    hidden = jnp.tanh(jnp.dot(reps, ffw, preferred_element_type=f32)
                      + vrow(ROW_FF_B))                          # (SLOTS, HID)
    out_ref[...] = jnp.sum(hidden * vrow(ROW_V_W), axis=-1, keepdims=True)


# ----------------------------- parameter init --------------------------------
def init_params(key):
    def nrm(k, shape, scale=0.02):
        return (scale * jax.random.normal(k, shape)).astype(jnp.float32)

    keys = jax.random.split(key, 12)
    it = iter(keys)
    enc = {
        "wq": nrm(next(it), (NUM_LAYERS, HID, HID)),
        "bq": jnp.zeros((NUM_LAYERS, 1, HID), jnp.float32),
        "wk": nrm(next(it), (NUM_LAYERS, HID, HID)),
        "bk": jnp.zeros((NUM_LAYERS, 1, HID), jnp.float32),
        "wv": nrm(next(it), (NUM_LAYERS, HID, HID)),
        "bv": jnp.zeros((NUM_LAYERS, 1, HID), jnp.float32),
        "wo": nrm(next(it), (NUM_LAYERS, HID, HID)),
        "bo": jnp.zeros((NUM_LAYERS, 1, HID), jnp.float32),
        "g1": jnp.ones((NUM_LAYERS, 1, HID), jnp.float32),
        "be1": jnp.zeros((NUM_LAYERS, 1, HID), jnp.float32),
        "w1": nrm(next(it), (NUM_LAYERS, HID, FFN)),
        "bi1": jnp.zeros((NUM_LAYERS, 1, FFN), jnp.float32),
        "w2": nrm(next(it), (NUM_LAYERS, FFN, HID)),
        "bi2": jnp.zeros((NUM_LAYERS, 1, HID), jnp.float32),
        "g2": jnp.ones((NUM_LAYERS, 1, HID), jnp.float32),
        "be2": jnp.zeros((NUM_LAYERS, 1, HID), jnp.float32),
    }
    return {
        "word_emb": nrm(next(it), (VOCAB, HID)),
        "pos_emb":  nrm(next(it), (MAX_POS, HID)),
        "tok_emb":  nrm(next(it), (TYPE_VOCAB, HID)),
        "ctx_emb":  nrm(next(it), (CTX_DIM, HID)),
        "emb_ln_g": jnp.ones((1, HID), jnp.float32),
        "emb_ln_b": jnp.zeros((1, HID), jnp.float32),
        # PyTorch Linear weights stored transposed -> (in, out) here
        "ff_w": nrm(next(it), (HID, HID)),
        "ff_b": jnp.zeros((1, HID), jnp.float32),
        "v_w":  nrm(next(it), (1, HID)),      # Linear(hid, 1, bias=False), row form
        "enc": enc,
    }


def pack_params(p):
    """Consolidate per-tensor weights into a few lane-dense kernel operands."""
    e = p["enc"]

    # weight slab: per layer [wq|wk|wv|wo|w1] along lanes -> (L, 32, 256);
    # extra slot NUM_LAYERS holds the head ff weight in lanes 0:HID.
    wa = jnp.concatenate([e["wq"], e["wk"], e["wv"], e["wo"], e["w1"]], axis=-1)
    head_slab = jnp.zeros((1, HID, WA_LANES), jnp.float32).at[0, :, :HID].set(p["ff_w"])
    wa = jnp.concatenate([wa, head_slab], axis=0)                 # (L+1, HID, 256)

    def row(v):
        v = jnp.asarray(v, jnp.float32).reshape(-1)
        return jnp.pad(v, (0, VEC_W - v.shape[0]))[None, :]

    rows = [row(p["emb_ln_g"]), row(p["emb_ln_b"]), row(p["ff_b"]), row(p["v_w"])]
    for l in range(NUM_LAYERS):
        bqkv = jnp.concatenate([e["bq"][l], e["bk"][l], e["bv"][l]], axis=-1)
        rows += [row(bqkv), row(e["bo"][l]), row(e["g1"][l]), row(e["be1"][l]),
                 row(e["bi1"][l]), row(e["bi2"][l]), row(e["g2"][l]), row(e["be2"][l])]
    vec = jnp.concatenate(rows, axis=0)                           # (VEC_ROWS, 128)
    assert vec.shape == (VEC_ROWS, VEC_W)

    return {
        "word_emb": p["word_emb"], "pos_emb": p["pos_emb"],
        "tok_emb": p["tok_emb"], "ctx_emb": p["ctx_emb"],
        "wa": wa, "w2": e["w2"], "vec": vec,
    }


# ----------------------------- full forward ----------------------------------
@jax.jit
def cat_slot_head_forward(packed, input_ids, token_type_ids, context_ids,
                          attention_mask, val_spans):
    # ---- embedding-table gathers: plain-JAX glue (no clean Pallas gather) ----
    positions = jnp.arange(SEQ)
    base = (packed["word_emb"][input_ids]
            + packed["pos_emb"][positions][None, :, :]
            + packed["tok_emb"][token_type_ids])                  # (B, S, H)
    ctx = packed["ctx_emb"][context_ids]                          # (B, S, H)
    xin = jnp.stack([base.reshape(TOKENS, HID), ctx.reshape(TOKENS, HID)], axis=0)

    # block-diagonal additive attention bias over flattened tokens
    tok_batch = jnp.arange(TOKENS, dtype=jnp.int32) // SEQ
    same_batch = tok_batch[:, None] == tok_batch[None, :]
    key_ok = attention_mask.reshape(TOKENS) > 0
    attn_bias = jnp.where(same_batch & key_ok[None, :], 0.0, -1e9).astype(jnp.float32)

    # span-pool additive mask: (SLOTS, TOKENS, 1), 0 in-span (same batch), else -1e30
    starts = val_spans[..., 0].astype(jnp.int32)                  # (B, NS)
    ends = val_spans[..., 1].astype(jnp.int32)
    tok_pos = jnp.arange(TOKENS, dtype=jnp.int32) % SEQ
    slot_batch = jnp.arange(BATCH, dtype=jnp.int32)[:, None, None]
    in_span = ((tok_pos[None, None, :] >= starts[:, :, None])
               & (tok_pos[None, None, :] < ends[:, :, None])
               & (tok_batch[None, None, :] == slot_batch)
               & (starts[:, :, None] >= 0))
    pool_mask = jnp.where(in_span, 0.0, -1e30).astype(jnp.float32)
    pool_mask = pool_mask.reshape(SLOTS, TOKENS, 1)

    logits = pl.pallas_call(
        cat_slot_head_kernel,
        out_shape=jax.ShapeDtypeStruct((SLOTS, 1), jnp.float32),
    )(xin, attn_bias, pool_mask, packed["wa"], packed["w2"], packed["vec"])

    # TODO(synk): cross-entropy loss path (labels is not None) not implemented.
    return logits.reshape(BATCH, NUM_SLOTS)


# ----------------------------- main ------------------------------------------
if __name__ == "__main__":
    key = jax.random.PRNGKey(0)
    k_param, k_ids, k_ctx = jax.random.split(key, 3)

    params = init_params(k_param)
    packed = pack_params(params)

    input_ids = jax.random.randint(k_ids, (BATCH, SEQ), 0, VOCAB, dtype=jnp.int32)
    token_type_ids = jnp.zeros((BATCH, SEQ), jnp.int32).at[:, SEQ // 2:].set(1)
    context_ids = jax.random.randint(k_ctx, (BATCH, SEQ), 0, CTX_DIM, dtype=jnp.int32)
    attention_mask = jnp.ones((BATCH, SEQ), jnp.int32).at[1, -2:].set(0)

    val_spans = jnp.array(
        [[[0, 3], [3, 6], [-1, -1], [2, 8]],
         [[1, 4], [-1, -1], [0, 8], [5, 7]]], dtype=jnp.int32)   # (B, NUM_SLOTS, 2)

    logits = cat_slot_head_forward(packed, input_ids, token_type_ids,
                                   context_ids, attention_mask, val_spans)
    jax.block_until_ready(logits)
    assert logits.shape == (BATCH, NUM_SLOTS) and logits.dtype == jnp.float32
    print("KERNEL_OK")
</pallas_src>

<mosaic_0001>
module attributes {stable_mosaic.version = 11 : i64} {
  func.func @cat_slot_head_kernel(%arg0: memref<2x16x32xf32, #tpu.memory_space<vmem>>, %arg1: memref<16x16xf32, #tpu.memory_space<vmem>>, %arg2: memref<8x16x1xf32, #tpu.memory_space<vmem>>, %arg3: memref<3x32x256xf32, #tpu.memory_space<vmem>>, %arg4: memref<2x128x32xf32, #tpu.memory_space<vmem>>, %arg5: memref<20x128xf32, #tpu.memory_space<vmem>>, %arg6: memref<8x1xf32, #tpu.memory_space<vmem>>) attributes {dimension_semantics = [], scalar_prefetch = 0 : i64, scratch_operands = 0 : i64, tpu.core_type = #tpu.core_type<tc>} {
    %c0 = arith.constant 0 : index
    %c0_0 = arith.constant 0 : index
    %0 = vector.load %arg5[%c0, %c0_0] : memref<20x128xf32, #tpu.memory_space<vmem>>, vector<1x32xf32>
    %c1 = arith.constant 1 : index
    %c0_1 = arith.constant 0 : index
    %1 = vector.load %arg5[%c1, %c0_1] : memref<20x128xf32, #tpu.memory_space<vmem>>, vector<1x32xf32>
    %c0_2 = arith.constant 0 : index
    %c0_3 = arith.constant 0 : index
    %c0_4 = arith.constant 0 : index
    %2 = vector.load %arg0[%c0_2, %c0_3, %c0_4] : memref<2x16x32xf32, #tpu.memory_space<vmem>>, vector<1x16x32xf32>
    %3 = vector.shape_cast %2 : vector<1x16x32xf32> to vector<16x32xf32>
    %cst = arith.constant dense<0.000000e+00> : vector<16xf32>
    %4 = vector.multi_reduction <add>, %3, %cst [1] : vector<16x32xf32> to vector<16xf32>
    %5 = vector.shape_cast %4 : vector<16xf32> to vector<16x1xf32>
    %cst_5 = arith.constant 3.200000e+01 : f32
    %6 = vector.broadcast %cst_5 : f32 to vector<16x1xf32>
    %7 = arith.divf %5, %6 : vector<16x1xf32>
    %8 = vector.broadcast %7 : vector<16x1xf32> to vector<16x32xf32>
    %9 = arith.subf %3, %8 : vector<16x32xf32>
    %10 = arith.mulf %9, %9 : vector<16x32xf32>
    %cst_6 = arith.constant dense<0.000000e+00> : vector<16xf32>
    %11 = vector.multi_reduction <add>, %10, %cst_6 [1] : vector<16x32xf32> to vector<16xf32>
    %12 = vector.shape_cast %11 : vector<16xf32> to vector<16x1xf32>
    %cst_7 = arith.constant 3.200000e+01 : f32
    %13 = vector.broadcast %cst_7 : f32 to vector<16x1xf32>
    %14 = arith.divf %12, %13 : vector<16x1xf32>
    %15 = vector.broadcast %7 : vector<16x1xf32> to vector<16x32xf32>
    %16 = arith.subf %3, %15 : vector<16x32xf32>
    %cst_8 = arith.constant 9.99999996E-13 : f32
    %17 = vector.broadcast %cst_8 : f32 to vector<16x1xf32>
    %18 = arith.addf %14, %17 : vector<16x1xf32>
    %19 = math.rsqrt %18 : vector<16x1xf32>
    %20 = vector.broadcast %19 : vector<16x1xf32> to vector<16x32xf32>
    %21 = arith.mulf %16, %20 : vector<16x32xf32>
    %22 = vector.broadcast %0 : vector<1x32xf32> to vector<16x32xf32>
    %23 = arith.mulf %21, %22 : vector<16x32xf32>
    %24 = vector.broadcast %1 : vector<1x32xf32> to vector<16x32xf32>
    %25 = arith.addf %23, %24 : vector<16x32xf32>
    %c1_9 = arith.constant 1 : index
    %c0_10 = arith.constant 0 : index
    %c0_11 = arith.constant 0 : index
    %26 = vector.load %arg0[%c1_9, %c0_10, %c0_11] : memref<2x16x32xf32, #tpu.memory_space<vmem>>, vector<1x16x32xf32>
    %27 = vector.shape_cast %26 : vector<1x16x32xf32> to vector<16x32xf32>
    %28 = arith.addf %25, %27 : vector<16x32xf32>
    %cst_12 = arith.constant dense<0.000000e+00> : vector<16xf32>
    %29 = vector.multi_reduction <add>, %28, %cst_12 [1] : vector<16x32xf32> to vector<16xf32>
    %30 = vector.shape_cast %29 : vector<16xf32> to vector<16x1xf32>
    %cst_13 = arith.constant 3.200000e+01 : f32
    %31 = vector.broadcast %cst_13 : f32 to vector<16x1xf32>
    %32 = arith.divf %30, %31 : vector<16x1xf32>
    %33 = vector.broadcast %32 : vector<16x1xf32> to vector<16x32xf32>
    %34 = arith.subf %28, %33 : vector<16x32xf32>
    %35 = arith.mulf %34, %34 : vector<16x32xf32>
    %cst_14 = arith.constant dense<0.000000e+00> : vector<16xf32>
    %36 = vector.multi_reduction <add>, %35, %cst_14 [1] : vector<16x32xf32> to vector<16xf32>
    %37 = vector.shape_cast %36 : vector<16xf32> to vector<16x1xf32>
    %cst_15 = arith.constant 3.200000e+01 : f32
    %38 = vector.broadcast %cst_15 : f32 to vector<16x1xf32>
    %39 = arith.divf %37, %38 : vector<16x1xf32>
    %40 = vector.broadcast %32 : vector<16x1xf32> to vector<16x32xf32>
    %41 = arith.subf %28, %40 : vector<16x32xf32>
    %cst_16 = arith.constant 9.99999996E-13 : f32
    %42 = vector.broadcast %cst_16 : f32 to vector<16x1xf32>
    %43 = arith.addf %39, %42 : vector<16x1xf32>
    %44 = math.rsqrt %43 : vector<16x1xf32>
    %45 = vector.broadcast %44 : vector<16x1xf32> to vector<16x32xf32>
    %46 = arith.mulf %41, %45 : vector<16x32xf32>
    %47 = vector.broadcast %0 : vector<1x32xf32> to vector<16x32xf32>
    %48 = arith.mulf %46, %47 : vector<16x32xf32>
    %49 = vector.broadcast %1 : vector<1x32xf32> to vector<16x32xf32>
    %50 = arith.addf %48, %49 : vector<16x32xf32>
    %c0_17 = arith.constant 0 : index
    %c0_18 = arith.constant 0 : index
    %51 = vector.load %arg1[%c0_17, %c0_18] : memref<16x16xf32, #tpu.memory_space<vmem>>, vector<16x16xf32>
    %c0_19 = arith.constant 0 : index
    %c0_20 = arith.constant 0 : index
    %c0_21 = arith.constant 0 : index
    %52 = vector.load %arg3[%c0_19, %c0_20, %c0_21] : memref<3x32x256xf32, #tpu.memory_space<vmem>>, vector<1x32x256xf32>
    %53 = vector.shape_cast %52 : vector<1x32x256xf32> to vector<32x256xf32>
    %54 = vector.extract_strided_slice %53 {offsets = [0, 0], sizes = [32, 96], strides = [1, 1]} : vector<32x256xf32> to vector<32x96xf32>
    %cst_22 = arith.constant dense<0.000000e+00> : vector<16x96xf32>
    %55 = tpu.matmul %50, %54, %cst_22 {dimension_numbers = #tpu.dot_dimension_numbers<[1], [0], [0], [1], [0, 0, 1, 1], [], []>} : vector<16x32xf32>, vector<32x96xf32>, vector<16x96xf32> -> vector<16x96xf32>
    %c4 = arith.constant 4 : index
    %c0_23 = arith.constant 0 : index
    %56 = vector.load %arg5[%c4, %c0_23] : memref<20x128xf32, #tpu.memory_space<vmem>>, vector<1x96xf32>
    %57 = vector.broadcast %56 : vector<1x96xf32> to vector<16x96xf32>
    %58 = arith.addf %55, %57 : vector<16x96xf32>
    %59 = vector.extract_strided_slice %53 {offsets = [0, 96], sizes = [32, 32], strides = [1, 1]} : vector<32x256xf32> to vector<32x32xf32>
    %c5 = arith.constant 5 : index
    %c0_24 = arith.constant 0 : index
    %60 = vector.load %arg5[%c5, %c0_24] : memref<20x128xf32, #tpu.memory_space<vmem>>, vector<1x32xf32>
    %61 = vector.extract_strided_slice %58 {offsets = [0, 0], sizes = [16, 16], strides = [1, 1]} : vector<16x96xf32> to vector<16x16xf32>
    %62 = vector.extract_strided_slice %58 {offsets = [0, 32], sizes = [16, 16], strides = [1, 1]} : vector<16x96xf32> to vector<16x16xf32>
    %63 = vector.extract_strided_slice %58 {offsets = [0, 64], sizes = [16, 16], strides = [1, 1]} : vector<16x96xf32> to vector<16x16xf32>
    %cst_25 = arith.constant dense<0.000000e+00> : vector<16x16xf32>
    %64 = tpu.matmul %61, %62, %cst_25 {dimension_numbers = #tpu.dot_dimension_numbers<[1], [1], [0], [0], [0, 0, 1, 0], [], []>} : vector<16x16xf32>, vector<16x16xf32>, vector<16x16xf32> -> vector<16x16xf32>
    %cst_26 = arith.constant 2.500000e-01 : f32
    %65 = vector.broadcast %cst_26 : f32 to vector<16x16xf32>
    %66 = arith.mulf %64, %65 : vector<16x16xf32>
    %67 = arith.addf %66, %51 : vector<16x16xf32>
    %cst_27 = arith.constant dense<0xFF800000> : vector<16xf32>
    %68 = vector.multi_reduction <maximumf>, %67, %cst_27 [1] : vector<16x16xf32> to vector<16xf32>
    %69 = vector.shape_cast %68 : vector<16xf32> to vector<16x1xf32>
    %70 = vector.broadcast %69 : vector<16x1xf32> to vector<16x16xf32>
    %71 = arith.subf %67, %70 : vector<16x16xf32>
    %72 = math.exp %71 : vector<16x16xf32>
    %cst_28 = arith.constant dense<0.000000e+00> : vector<16xf32>
    %73 = vector.multi_reduction <add>, %72, %cst_28 [1] : vector<16x16xf32> to vector<16xf32>
    %74 = vector.shape_cast %73 : vector<16xf32> to vector<16x1xf32>
    %75 = tpu.reciprocal %74 {approx = true} : vector<16x1xf32> -> vector<16x1xf32>
    %76 = vector.broadcast %75 : vector<16x1xf32> to vector<16x16xf32>
    %77 = arith.mulf %72, %76 : vector<16x16xf32>
    %cst_29 = arith.constant dense<0.000000e+00> : vector<16x16xf32>
    %78 = tpu.matmul %77, %63, %cst_29 {dimension_numbers = #tpu.dot_dimension_numbers<[1], [0], [0], [1], [0, 0, 1, 1], [], []>} : vector<16x16xf32>, vector<16x16xf32>, vector<16x16xf32> -> vector<16x16xf32>
    %79 = vector.extract_strided_slice %59 {offsets = [0, 0], sizes = [16, 32], strides = [1, 1]} : vector<32x32xf32> to vector<16x32xf32>
    %cst_30 = arith.constant dense<0.000000e+00> : vector<16x32xf32>
    %80 = tpu.matmul %78, %79, %cst_30 {dimension_numbers = #tpu.dot_dimension_numbers<[1], [0], [0], [1], [0, 0, 1, 1], [], []>} : vector<16x16xf32>, vector<16x32xf32>, vector<16x32xf32> -> vector<16x32xf32>
    %81 = vector.broadcast %60 : vector<1x32xf32> to vector<16x32xf32>
    %82 = arith.addf %81, %80 : vector<16x32xf32>
    %83 = vector.extract_strided_slice %58 {offsets = [0, 16], sizes = [16, 16], strides = [1, 1]} : vector<16x96xf32> to vector<16x16xf32>
    %84 = vector.extract_strided_slice %58 {offsets = [0, 48], sizes = [16, 16], strides = [1, 1]} : vector<16x96xf32> to vector<16x16xf32>
    %85 = vector.extract_strided_slice %58 {offsets = [0, 80], sizes = [16, 16], strides = [1, 1]} : vector<16x96xf32> to vector<16x16xf32>
    %cst_31 = arith.constant dense<0.000000e+00> : vector<16x16xf32>
    %86 = tpu.matmul %83, %84, %cst_31 {dimension_numbers = #tpu.dot_dimension_numbers<[1], [1], [0], [0], [0, 0, 1, 0], [], []>} : vector<16x16xf32>, vector<16x16xf32>, vector<16x16xf32> -> vector<16x16xf32>
    %cst_32 = arith.constant 2.500000e-01 : f32
    %87 = vector.broadcast %cst_32 : f32 to vector<16x16xf32>
    %88 = arith.mulf %86, %87 : vector<16x16xf32>
    %89 = arith.addf %88, %51 : vector<16x16xf32>
    %cst_33 = arith.constant dense<0xFF800000> : vector<16xf32>
    %90 = vector.multi_reduction <maximumf>, %89, %cst_33 [1] : vector<16x16xf32> to vector<16xf32>
    %91 = vector.shape_cast %90 : vector<16xf32> to vector<16x1xf32>
    %92 = vector.broadcast %91 : vector<16x1xf32> to vector<16x16xf32>
    %93 = arith.subf %89, %92 : vector<16x16xf32>
    %94 = math.exp %93 : vector<16x16xf32>
    %cst_34 = arith.constant dense<0.000000e+00> : vector<16xf32>
    %95 = vector.multi_reduction <add>, %94, %cst_34 [1] : vector<16x16xf32> to vector<16xf32>
    %96 = vector.shape_cast %95 : vector<16xf32> to vector<16x1xf32>
    %97 = tpu.reciprocal %96 {approx = true} : vector<16x1xf32> -> vector<16x1xf32>
    %98 = vector.broadcast %97 : vector<16x1xf32> to vector<16x16xf32>
    %99 = arith.mulf %94, %98 : vector<16x16xf32>
    %cst_35 = arith.constant dense<0.000000e+00> : vector<16x16xf32>
    %100 = tpu.matmul %99, %85, %cst_35 {dimension_numbers = #tpu.dot_dimension_numbers<[1], [0], [0], [1], [0, 0, 1, 1], [], []>} : vector<16x16xf32>, vector<16x16xf32>, vector<16x16xf32> -> vector<16x16xf32>
    %101 = vector.extract_strided_slice %59 {offsets = [16, 0], sizes = [16, 32], strides = [1, 1]} : vector<32x32xf32> to vector<16x32xf32>
    %cst_36 = arith.constant dense<0.000000e+00> : vector<16x32xf32>
    %102 = tpu.matmul %100, %101, %cst_36 {dimension_numbers = #tpu.dot_dimension_numbers<[1], [0], [0], [1], [0, 0, 1, 1], [], []>} : vector<16x16xf32>, vector<16x32xf32>, vector<16x32xf32> -> vector<16x32xf32>
    %103 = arith.addf %82, %102 : vector<16x32xf32>
    %104 = arith.addf %50, %103 : vector<16x32xf32>
    %c6 = arith.constant 6 : index
    %c0_37 = arith.constant 0 : index
    %105 = vector.load %arg5[%c6, %c0_37] : memref<20x128xf32, #tpu.memory_space<vmem>>, vector<1x32xf32>
    %c7 = arith.constant 7 : index
    %c0_38 = arith.constant 0 : index
    %106 = vector.load %arg5[%c7, %c0_38] : memref<20x128xf32, #tpu.memory_space<vmem>>, vector<1x32xf32>
    %cst_39 = arith.constant dense<0.000000e+00> : vector<16xf32>
    %107 = vector.multi_reduction <add>, %104, %cst_39 [1] : vector<16x32xf32> to vector<16xf32>
    %108 = vector.shape_cast %107 : vector<16xf32> to vector<16x1xf32>
    %cst_40 = arith.constant 3.200000e+01 : f32
    %109 = vector.broadcast %cst_40 : f32 to vector<16x1xf32>
    %110 = arith.divf %108, %109 : vector<16x1xf32>
    %111 = vector.broadcast %110 : vector<16x1xf32> to vector<16x32xf32>
    %112 = arith.subf %104, %111 : vector<16x32xf32>
    %113 = arith.mulf %112, %112 : vector<16x32xf32>
    %cst_41 = arith.constant dense<0.000000e+00> : vector<16xf32>
    %114 = vector.multi_reduction <add>, %113, %cst_41 [1] : vector<16x32xf32> to vector<16xf32>
    %115 = vector.shape_cast %114 : vector<16xf32> to vector<16x1xf32>
    %cst_42 = arith.constant 3.200000e+01 : f32
    %116 = vector.broadcast %cst_42 : f32 to vector<16x1xf32>
    %117 = arith.divf %115, %116 : vector<16x1xf32>
    %118 = vector.broadcast %110 : vector<16x1xf32> to vector<16x32xf32>
    %119 = arith.subf %104, %118 : vector<16x32xf32>
    %cst_43 = arith.constant 9.99999996E-13 : f32
    %120 = vector.broadcast %cst_43 : f32 to vector<16x1xf32>
    %121 = arith.addf %117, %120 : vector<16x1xf32>
    %122 = math.rsqrt %121 : vector<16x1xf32>
    %123 = vector.broadcast %122 : vector<16x1xf32> to vector<16x32xf32>
    %124 = arith.mulf %119, %123 : vector<16x32xf32>
    %125 = vector.broadcast %105 : vector<1x32xf32> to vector<16x32xf32>
    %126 = arith.mulf %124, %125 : vector<16x32xf32>
    %127 = vector.broadcast %106 : vector<1x32xf32> to vector<16x32xf32>
    %128 = arith.addf %126, %127 : vector<16x32xf32>
    %129 = vector.extract_strided_slice %53 {offsets = [0, 128], sizes = [32, 128], strides = [1, 1]} : vector<32x256xf32> to vector<32x128xf32>
    %cst_44 = arith.constant dense<0.000000e+00> : vector<16x128xf32>
    %130 = tpu.matmul %128, %129, %cst_44 {dimension_numbers = #tpu.dot_dimension_numbers<[1], [0], [0], [1], [0, 0, 1, 1], [], []>} : vector<16x32xf32>, vector<32x128xf32>, vector<16x128xf32> -> vector<16x128xf32>
    %c8 = arith.constant 8 : index
    %c0_45 = arith.constant 0 : index
    %131 = vector.load %arg5[%c8, %c0_45] : memref<20x128xf32, #tpu.memory_space<vmem>>, vector<1x128xf32>
    %132 = vector.broadcast %131 : vector<1x128xf32> to vector<16x128xf32>
    %133 = arith.addf %130, %132 : vector<16x128xf32>
    %cst_46 = arith.constant 5.000000e-01 : f32
    %134 = vector.broadcast %cst_46 : f32 to vector<16x128xf32>
    %135 = arith.mulf %134, %133 : vector<16x128xf32>
    %cst_47 = arith.constant 4.471500e-02 : f32
    %136 = vector.broadcast %cst_47 : f32 to vector<16x128xf32>
    %137 = arith.mulf %136, %133 : vector<16x128xf32>
    %138 = arith.mulf %137, %133 : vector<16x128xf32>
    %139 = arith.mulf %138, %133 : vector<16x128xf32>
    %140 = arith.addf %133, %139 : vector<16x128xf32>
    %cst_48 = arith.constant 0.797884583 : f32
    %141 = vector.broadcast %cst_48 : f32 to vector<16x128xf32>
    %142 = arith.mulf %141, %140 : vector<16x128xf32>
    %143 = math.tanh %142 : vector<16x128xf32>
    %cst_49 = arith.constant 1.000000e+00 : f32
    %144 = vector.broadcast %cst_49 : f32 to vector<16x128xf32>
    %145 = arith.addf %144, %143 : vector<16x128xf32>
    %146 = arith.mulf %135, %145 : vector<16x128xf32>
    %c0_50 = arith.constant 0 : index
    %c0_51 = arith.constant 0 : index
    %c0_52 = arith.constant 0 : index
    %147 = vector.load %arg4[%c0_50, %c0_51, %c0_52] : memref<2x128x32xf32, #tpu.memory_space<vmem>>, vector<1x128x32xf32>
    %148 = vector.shape_cast %147 : vector<1x128x32xf32> to vector<128x32xf32>
    %cst_53 = arith.constant dense<0.000000e+00> : vector<16x32xf32>
    %149 = tpu.matmul %146, %148, %cst_53 {dimension_numbers = #tpu.dot_dimension_numbers<[1], [0], [0], [1], [0, 0, 1, 1], [], []>} : vector<16x128xf32>, vector<128x32xf32>, vector<16x32xf32> -> vector<16x32xf32>
    %c9 = arith.constant 9 : index
    %c0_54 = arith.constant 0 : index
    %150 = vector.load %arg5[%c9, %c0_54] : memref<20x128xf32, #tpu.memory_space<vmem>>, vector<1x32xf32>
    %151 = vector.broadcast %150 : vector<1x32xf32> to vector<16x32xf32>
    %152 = arith.addf %149, %151 : vector<16x32xf32>
    %153 = arith.addf %128, %152 : vector<16x32xf32>
    %c10 = arith.constant 10 : index
    %c0_55 = arith.constant 0 : index
    %154 = vector.load %arg5[%c10, %c0_55] : memref<20x128xf32, #tpu.memory_space<vmem>>, vector<1x32xf32>
    %c11 = arith.constant 11 : index
    %c0_56 = arith.constant 0 : index
    %155 = vector.load %arg5[%c11, %c0_56] : memref<20x128xf32, #tpu.memory_space<vmem>>, vector<1x32xf32>
    %cst_57 = arith.constant dense<0.000000e+00> : vector<16xf32>
    %156 = vector.multi_reduction <add>, %153, %cst_57 [1] : vector<16x32xf32> to vector<16xf32>
    %157 = vector.shape_cast %156 : vector<16xf32> to vector<16x1xf32>
    %cst_58 = arith.constant 3.200000e+01 : f32
    %158 = vector.broadcast %cst_58 : f32 to vector<16x1xf32>
    %159 = arith.divf %157, %158 : vector<16x1xf32>
    %160 = vector.broadcast %159 : vector<16x1xf32> to vector<16x32xf32>
    %161 = arith.subf %153, %160 : vector<16x32xf32>
    %162 = arith.mulf %161, %161 : vector<16x32xf32>
    %cst_59 = arith.constant dense<0.000000e+00> : vector<16xf32>
    %163 = vector.multi_reduction <add>, %162, %cst_59 [1] : vector<16x32xf32> to vector<16xf32>
    %164 = vector.shape_cast %163 : vector<16xf32> to vector<16x1xf32>
    %cst_60 = arith.constant 3.200000e+01 : f32
    %165 = vector.broadcast %cst_60 : f32 to vector<16x1xf32>
    %166 = arith.divf %164, %165 : vector<16x1xf32>
    %167 = vector.broadcast %159 : vector<16x1xf32> to vector<16x32xf32>
    %168 = arith.subf %153, %167 : vector<16x32xf32>
    %cst_61 = arith.constant 9.99999996E-13 : f32
    %169 = vector.broadcast %cst_61 : f32 to vector<16x1xf32>
    %170 = arith.addf %166, %169 : vector<16x1xf32>
    %171 = math.rsqrt %170 : vector<16x1xf32>
    %172 = vector.broadcast %171 : vector<16x1xf32> to vector<16x32xf32>
    %173 = arith.mulf %168, %172 : vector<16x32xf32>
    %174 = vector.broadcast %154 : vector<1x32xf32> to vector<16x32xf32>
    %175 = arith.mulf %173, %174 : vector<16x32xf32>
    %176 = vector.broadcast %155 : vector<1x32xf32> to vector<16x32xf32>
    %177 = arith.addf %175, %176 : vector<16x32xf32>
    %c1_62 = arith.constant 1 : index
    %c0_63 = arith.constant 0 : index
    %c0_64 = arith.constant 0 : index
    %178 = vector.load %arg3[%c1_62, %c0_63, %c0_64] : memref<3x32x256xf32, #tpu.memory_space<vmem>>, vector<1x32x256xf32>
    %179 = vector.shape_cast %178 : vector<1x32x256xf32> to vector<32x256xf32>
    %180 = vector.extract_strided_slice %179 {offsets = [0, 0], sizes = [32, 96], strides = [1, 1]} : vector<32x256xf32> to vector<32x96xf32>
    %cst_65 = arith.constant dense<0.000000e+00> : vector<16x96xf32>
    %181 = tpu.matmul %177, %180, %cst_65 {dimension_numbers = #tpu.dot_dimension_numbers<[1], [0], [0], [1], [0, 0, 1, 1], [], []>} : vector<16x32xf32>, vector<32x96xf32>, vector<16x96xf32> -> vector<16x96xf32>
    %c12 = arith.constant 12 : index
    %c0_66 = arith.constant 0 : index
    %182 = vector.load %arg5[%c12, %c0_66] : memref<20x128xf32, #tpu.memory_space<vmem>>, vector<1x96xf32>
    %183 = vector.broadcast %182 : vector<1x96xf32> to vector<16x96xf32>
    %184 = arith.addf %181, %183 : vector<16x96xf32>
    %185 = vector.extract_strided_slice %179 {offsets = [0, 96], sizes = [32, 32], strides = [1, 1]} : vector<32x256xf32> to vector<32x32xf32>
    %c13 = arith.constant 13 : index
    %c0_67 = arith.constant 0 : index
    %186 = vector.load %arg5[%c13, %c0_67] : memref<20x128xf32, #tpu.memory_space<vmem>>, vector<1x32xf32>
    %187 = vector.extract_strided_slice %184 {offsets = [0, 0], sizes = [16, 16], strides = [1, 1]} : vector<16x96xf32> to vector<16x16xf32>
    %188 = vector.extract_strided_slice %184 {offsets = [0, 32], sizes = [16, 16], strides = [1, 1]} : vector<16x96xf32> to vector<16x16xf32>
    %189 = vector.extract_strided_slice %184 {offsets = [0, 64], sizes = [16, 16], strides = [1, 1]} : vector<16x96xf32> to vector<16x16xf32>
    %cst_68 = arith.constant dense<0.000000e+00> : vector<16x16xf32>
    %190 = tpu.matmul %187, %188, %cst_68 {dimension_numbers = #tpu.dot_dimension_numbers<[1], [1], [0], [0], [0, 0, 1, 0], [], []>} : vector<16x16xf32>, vector<16x16xf32>, vector<16x16xf32> -> vector<16x16xf32>
    %cst_69 = arith.constant 2.500000e-01 : f32
    %191 = vector.broadcast %cst_69 : f32 to vector<16x16xf32>
    %192 = arith.mulf %190, %191 : vector<16x16xf32>
    %193 = arith.addf %192, %51 : vector<16x16xf32>
    %cst_70 = arith.constant dense<0xFF800000> : vector<16xf32>
    %194 = vector.multi_reduction <maximumf>, %193, %cst_70 [1] : vector<16x16xf32> to vector<16xf32>
    %195 = vector.shape_cast %194 : vector<16xf32> to vector<16x1xf32>
    %196 = vector.broadcast %195 : vector<16x1xf32> to vector<16x16xf32>
    %197 = arith.subf %193, %196 : vector<16x16xf32>
    %198 = math.exp %197 : vector<16x16xf32>
    %cst_71 = arith.constant dense<0.000000e+00> : vector<16xf32>
    %199 = vector.multi_reduction <add>, %198, %cst_71 [1] : vector<16x16xf32> to vector<16xf32>
    %200 = vector.shape_cast %199 : vector<16xf32> to vector<16x1xf32>
    %201 = tpu.reciprocal %200 {approx = true} : vector<16x1xf32> -> vector<16x1xf32>
    %202 = vector.broadcast %201 : vector<16x1xf32> to vector<16x16xf32>
    %203 = arith.mulf %198, %202 : vector<16x16xf32>
    %cst_72 = arith.constant dense<0.000000e+00> : vector<16x16xf32>
    %204 = tpu.matmul %203, %189, %cst_72 {dimension_numbers = #tpu.dot_dimension_numbers<[1], [0], [0], [1], [0, 0, 1, 1], [], []>} : vector<16x16xf32>, vector<16x16xf32>, vector<16x16xf32> -> vector<16x16xf32>
    %205 = vector.extract_strided_slice %185 {offsets = [0, 0], sizes = [16, 32], strides = [1, 1]} : vector<32x32xf32> to vector<16x32xf32>
    %cst_73 = arith.constant dense<0.000000e+00> : vector<16x32xf32>
    %206 = tpu.matmul %204, %205, %cst_73 {dimension_numbers = #tpu.dot_dimension_numbers<[1], [0], [0], [1], [0, 0, 1, 1], [], []>} : vector<16x16xf32>, vector<16x32xf32>, vector<16x32xf32> -> vector<16x32xf32>
    %207 = vector.broadcast %186 : vector<1x32xf32> to vector<16x32xf32>
    %208 = arith.addf %207, %206 : vector<16x32xf32>
    %209 = vector.extract_strided_slice %184 {offsets = [0, 16], sizes = [16, 16], strides = [1, 1]} : vector<16x96xf32> to vector<16x16xf32>
    %210 = vector.extract_strided_slice %184 {offsets = [0, 48], sizes = [16, 16], strides = [1, 1]} : vector<16x96xf32> to vector<16x16xf32>
    %211 = vector.extract_strided_slice %184 {offsets = [0, 80], sizes = [16, 16], strides = [1, 1]} : vector<16x96xf32> to vector<16x16xf32>
    %cst_74 = arith.constant dense<0.000000e+00> : vector<16x16xf32>
    %212 = tpu.matmul %209, %210, %cst_74 {dimension_numbers = #tpu.dot_dimension_numbers<[1], [1], [0], [0], [0, 0, 1, 0], [], []>} : vector<16x16xf32>, vector<16x16xf32>, vector<16x16xf32> -> vector<16x16xf32>
    %cst_75 = arith.constant 2.500000e-01 : f32
    %213 = vector.broadcast %cst_75 : f32 to vector<16x16xf32>
    %214 = arith.mulf %212, %213 : vector<16x16xf32>
    %215 = arith.addf %214, %51 : vector<16x16xf32>
    %cst_76 = arith.constant dense<0xFF800000> : vector<16xf32>
    %216 = vector.multi_reduction <maximumf>, %215, %cst_76 [1] : vector<16x16xf32> to vector<16xf32>
    %217 = vector.shape_cast %216 : vector<16xf32> to vector<16x1xf32>
    %218 = vector.broadcast %217 : vector<16x1xf32> to vector<16x16xf32>
    %219 = arith.subf %215, %218 : vector<16x16xf32>
    %220 = math.exp %219 : vector<16x16xf32>
    %cst_77 = arith.constant dense<0.000000e+00> : vector<16xf32>
    %221 = vector.multi_reduction <add>, %220, %cst_77 [1] : vector<16x16xf32> to vector<16xf32>
    %222 = vector.shape_cast %221 : vector<16xf32> to vector<16x1xf32>
    %223 = tpu.reciprocal %222 {approx = true} : vector<16x1xf32> -> vector<16x1xf32>
    %224 = vector.broadcast %223 : vector<16x1xf32> to vector<16x16xf32>
    %225 = arith.mulf %220, %224 : vector<16x16xf32>
    %cst_78 = arith.constant dense<0.000000e+00> : vector<16x16xf32>
    %226 = tpu.matmul %225, %211, %cst_78 {dimension_numbers = #tpu.dot_dimension_numbers<[1], [0], [0], [1], [0, 0, 1, 1], [], []>} : vector<16x16xf32>, vector<16x16xf32>, vector<16x16xf32> -> vector<16x16xf32>
    %227 = vector.extract_strided_slice %185 {offsets = [16, 0], sizes = [16, 32], strides = [1, 1]} : vector<32x32xf32> to vector<16x32xf32>
    %cst_79 = arith.constant dense<0.000000e+00> : vector<16x32xf32>
    %228 = tpu.matmul %226, %227, %cst_79 {dimension_numbers = #tpu.dot_dimension_numbers<[1], [0], [0], [1], [0, 0, 1, 1], [], []>} : vector<16x16xf32>, vector<16x32xf32>, vector<16x32xf32> -> vector<16x32xf32>
    %229 = arith.addf %208, %228 : vector<16x32xf32>
    %230 = arith.addf %177, %229 : vector<16x32xf32>
    %c14 = arith.constant 14 : index
    %c0_80 = arith.constant 0 : index
    %231 = vector.load %arg5[%c14, %c0_80] : memref<20x128xf32, #tpu.memory_space<vmem>>, vector<1x32xf32>
    %c15 = arith.constant 15 : index
    %c0_81 = arith.constant 0 : index
    %232 = vector.load %arg5[%c15, %c0_81] : memref<20x128xf32, #tpu.memory_space<vmem>>, vector<1x32xf32>
    %cst_82 = arith.constant dense<0.000000e+00> : vector<16xf32>
    %233 = vector.multi_reduction <add>, %230, %cst_82 [1] : vector<16x32xf32> to vector<16xf32>
    %234 = vector.shape_cast %233 : vector<16xf32> to vector<16x1xf32>
    %cst_83 = arith.constant 3.200000e+01 : f32
    %235 = vector.broadcast %cst_83 : f32 to vector<16x1xf32>
    %236 = arith.divf %234, %235 : vector<16x1xf32>
    %237 = vector.broadcast %236 : vector<16x1xf32> to vector<16x32xf32>
    %238 = arith.subf %230, %237 : vector<16x32xf32>
    %239 = arith.mulf %238, %238 : vector<16x32xf32>
    %cst_84 = arith.constant dense<0.000000e+00> : vector<16xf32>
    %240 = vector.multi_reduction <add>, %239, %cst_84 [1] : vector<16x32xf32> to vector<16xf32>
    %241 = vector.shape_cast %240 : vector<16xf32> to vector<16x1xf32>
    %cst_85 = arith.constant 3.200000e+01 : f32
    %242 = vector.broadcast %cst_85 : f32 to vector<16x1xf32>
    %243 = arith.divf %241, %242 : vector<16x1xf32>
    %244 = vector.broadcast %236 : vector<16x1xf32> to vector<16x32xf32>
    %245 = arith.subf %230, %244 : vector<16x32xf32>
    %cst_86 = arith.constant 9.99999996E-13 : f32
    %246 = vector.broadcast %cst_86 : f32 to vector<16x1xf32>
    %247 = arith.addf %243, %246 : vector<16x1xf32>
    %248 = math.rsqrt %247 : vector<16x1xf32>
    %249 = vector.broadcast %248 : vector<16x1xf32> to vector<16x32xf32>
    %250 = arith.mulf %245, %249 : vector<16x32xf32>
    %251 = vector.broadcast %231 : vector<1x32xf32> to vector<16x32xf32>
    %252 = arith.mulf %250, %251 : vector<16x32xf32>
    %253 = vector.broadcast %232 : vector<1x32xf32> to vector<16x32xf32>
    %254 = arith.addf %252, %253 : vector<16x32xf32>
    %255 = vector.extract_strided_slice %179 {offsets = [0, 128], sizes = [32, 128], strides = [1, 1]} : vector<32x256xf32> to vector<32x128xf32>
    %cst_87 = arith.constant dense<0.000000e+00> : vector<16x128xf32>
    %256 = tpu.matmul %254, %255, %cst_87 {dimension_numbers = #tpu.dot_dimension_numbers<[1], [0], [0], [1], [0, 0, 1, 1], [], []>} : vector<16x32xf32>, vector<32x128xf32>, vector<16x128xf32> -> vector<16x128xf32>
    %c16 = arith.constant 16 : index
    %c0_88 = arith.constant 0 : index
    %257 = vector.load %arg5[%c16, %c0_88] : memref<20x128xf32, #tpu.memory_space<vmem>>, vector<1x128xf32>
    %258 = vector.broadcast %257 : vector<1x128xf32> to vector<16x128xf32>
    %259 = arith.addf %256, %258 : vector<16x128xf32>
    %cst_89 = arith.constant 5.000000e-01 : f32
    %260 = vector.broadcast %cst_89 : f32 to vector<16x128xf32>
    %261 = arith.mulf %260, %259 : vector<16x128xf32>
    %cst_90 = arith.constant 4.471500e-02 : f32
    %262 = vector.broadcast %cst_90 : f32 to vector<16x128xf32>
    %263 = arith.mulf %262, %259 : vector<16x128xf32>
    %264 = arith.mulf %263, %259 : vector<16x128xf32>
    %265 = arith.mulf %264, %259 : vector<16x128xf32>
    %266 = arith.addf %259, %265 : vector<16x128xf32>
    %cst_91 = arith.constant 0.797884583 : f32
    %267 = vector.broadcast %cst_91 : f32 to vector<16x128xf32>
    %268 = arith.mulf %267, %266 : vector<16x128xf32>
    %269 = math.tanh %268 : vector<16x128xf32>
    %cst_92 = arith.constant 1.000000e+00 : f32
    %270 = vector.broadcast %cst_92 : f32 to vector<16x128xf32>
    %271 = arith.addf %270, %269 : vector<16x128xf32>
    %272 = arith.mulf %261, %271 : vector<16x128xf32>
    %c1_93 = arith.constant 1 : index
    %c0_94 = arith.constant 0 : index
    %c0_95 = arith.constant 0 : index
    %273 = vector.load %arg4[%c1_93, %c0_94, %c0_95] : memref<2x128x32xf32, #tpu.memory_space<vmem>>, vector<1x128x32xf32>
    %274 = vector.shape_cast %273 : vector<1x128x32xf32> to vector<128x32xf32>
    %cst_96 = arith.constant dense<0.000000e+00> : vector<16x32xf32>
    %275 = tpu.matmul %272, %274, %cst_96 {dimension_numbers = #tpu.dot_dimension_numbers<[1], [0], [0], [1], [0, 0, 1, 1], [], []>} : vector<16x128xf32>, vector<128x32xf32>, vector<16x32xf32> -> vector<16x32xf32>
    %c17 = arith.constant 17 : index
    %c0_97 = arith.constant 0 : index
    %276 = vector.load %arg5[%c17, %c0_97] : memref<20x128xf32, #tpu.memory_space<vmem>>, vector<1x32xf32>
    %277 = vector.broadcast %276 : vector<1x32xf32> to vector<16x32xf32>
    %278 = arith.addf %275, %277 : vector<16x32xf32>
    %279 = arith.addf %254, %278 : vector<16x32xf32>
    %c18 = arith.constant 18 : index
    %c0_98 = arith.constant 0 : index
    %280 = vector.load %arg5[%c18, %c0_98] : memref<20x128xf32, #tpu.memory_space<vmem>>, vector<1x32xf32>
    %c19 = arith.constant 19 : index
    %c0_99 = arith.constant 0 : index
    %281 = vector.load %arg5[%c19, %c0_99] : memref<20x128xf32, #tpu.memory_space<vmem>>, vector<1x32xf32>
    %cst_100 = arith.constant dense<0.000000e+00> : vector<16xf32>
    %282 = vector.multi_reduction <add>, %279, %cst_100 [1] : vector<16x32xf32> to vector<16xf32>
    %283 = vector.shape_cast %282 : vector<16xf32> to vector<16x1xf32>
    %cst_101 = arith.constant 3.200000e+01 : f32
    %284 = vector.broadcast %cst_101 : f32 to vector<16x1xf32>
    %285 = arith.divf %283, %284 : vector<16x1xf32>
    %286 = vector.broadcast %285 : vector<16x1xf32> to vector<16x32xf32>
    %287 = arith.subf %279, %286 : vector<16x32xf32>
    %288 = arith.mulf %287, %287 : vector<16x32xf32>
    %cst_102 = arith.constant dense<0.000000e+00> : vector<16xf32>
    %289 = vector.multi_reduction <add>, %288, %cst_102 [1] : vector<16x32xf32> to vector<16xf32>
    %290 = vector.shape_cast %289 : vector<16xf32> to vector<16x1xf32>
    %cst_103 = arith.constant 3.200000e+01 : f32
    %291 = vector.broadcast %cst_103 : f32 to vector<16x1xf32>
    %292 = arith.divf %290, %291 : vector<16x1xf32>
    %293 = vector.broadcast %285 : vector<16x1xf32> to vector<16x32xf32>
    %294 = arith.subf %279, %293 : vector<16x32xf32>
    %cst_104 = arith.constant 9.99999996E-13 : f32
    %295 = vector.broadcast %cst_104 : f32 to vector<16x1xf32>
    %296 = arith.addf %292, %295 : vector<16x1xf32>
    %297 = math.rsqrt %296 : vector<16x1xf32>
    %298 = vector.broadcast %297 : vector<16x1xf32> to vector<16x32xf32>
    %299 = arith.mulf %294, %298 : vector<16x32xf32>
    %300 = vector.broadcast %280 : vector<1x32xf32> to vector<16x32xf32>
    %301 = arith.mulf %299, %300 : vector<16x32xf32>
    %302 = vector.broadcast %281 : vector<1x32xf32> to vector<16x32xf32>
    %303 = arith.addf %301, %302 : vector<16x32xf32>
    %304 = vector.shape_cast %303 : vector<16x32xf32> to vector<1x16x32xf32>
    %c0_105 = arith.constant 0 : index
    %c0_106 = arith.constant 0 : index
    %c0_107 = arith.constant 0 : index
    %305 = vector.load %arg2[%c0_105, %c0_106, %c0_107] : memref<8x16x1xf32, #tpu.memory_space<vmem>>, vector<8x16x1xf32>
    %306 = vector.broadcast %304 : vector<1x16x32xf32> to vector<8x16x32xf32>
    %307 = vector.broadcast %305 : vector<8x16x1xf32> to vector<8x16x32xf32>
    %308 = arith.addf %306, %307 : vector<8x16x32xf32>
    %cst_108 = arith.constant dense<0xFF800000> : vector<8x32xf32>
    %309 = vector.multi_reduction <maximumf>, %308, %cst_108 [1] : vector<8x16x32xf32> to vector<8x32xf32>
    %cst_109 = arith.constant -1.000000e+29 : f32
    %310 = vector.broadcast %cst_109 : f32 to vector<8x32xf32>
    %311 = arith.cmpf ogt, %309, %310 : vector<8x32xf32>
    %cst_110 = arith.constant 0.000000e+00 : f32
    %312 = vector.broadcast %cst_110 : f32 to vector<8x32xf32>
    %313 = arith.select %311, %309, %312 : vector<8x32xi1>, vector<8x32xf32>
    %c2 = arith.constant 2 : index
    %c0_111 = arith.constant 0 : index
    %c0_112 = arith.constant 0 : index
    %314 = vector.load %arg3[%c2, %c0_111, %c0_112] : memref<3x32x256xf32, #tpu.memory_space<vmem>>, vector<1x32x256xf32>
    %315 = vector.shape_cast %314 : vector<1x32x256xf32> to vector<32x256xf32>
    %316 = vector.extract_strided_slice %315 {offsets = [0, 0], sizes = [32, 32], strides = [1, 1]} : vector<32x256xf32> to vector<32x32xf32>
    %cst_113 = arith.constant dense<0.000000e+00> : vector<8x32xf32>
    %317 = tpu.matmul %313, %316, %cst_113 {dimension_numbers = #tpu.dot_dimension_numbers<[1], [0], [0], [1], [0, 0, 1, 1], [], []>} : vector<8x32xf32>, vector<32x32xf32>, vector<8x32xf32> -> vector<8x32xf32>
    %c2_114 = arith.constant 2 : index
    %c0_115 = arith.constant 0 : index
    %318 = vector.load %arg5[%c2_114, %c0_115] : memref<20x128xf32, #tpu.memory_space<vmem>>, vector<1x32xf32>
    %319 = vector.broadcast %318 : vector<1x32xf32> to vector<8x32xf32>
    %320 = arith.addf %317, %319 : vector<8x32xf32>
    %321 = math.tanh %320 : vector<8x32xf32>
    %c3 = arith.constant 3 : index
    %c0_116 = arith.constant 0 : index
    %322 = vector.load %arg5[%c3, %c0_116] : memref<20x128xf32, #tpu.memory_space<vmem>>, vector<1x32xf32>
    %323 = vector.broadcast %322 : vector<1x32xf32> to vector<8x32xf32>
    %324 = arith.mulf %321, %323 : vector<8x32xf32>
    %cst_117 = arith.constant dense<0.000000e+00> : vector<8xf32>
    %325 = vector.multi_reduction <add>, %324, %cst_117 [1] : vector<8x32xf32> to vector<8xf32>
    %326 = vector.shape_cast %325 : vector<8xf32> to vector<8x1xf32>
    %c0_118 = arith.constant 0 : index
    %c0_119 = arith.constant 0 : index
    %327 = vector.load %arg6[%c0_118, %c0_119] : memref<8x1xf32, #tpu.memory_space<vmem>>, vector<8x1xf32>
    tpu.vector_store %arg6[%c0_118, %c0_119], %326 {strides = array<i32>} : memref<8x1xf32, #tpu.memory_space<vmem>>, vector<8x1xf32>,
    return
  }
}

</mosaic_0001>

<bundles_post_ra>
// kernel: cat_slot_head_forward.1
= control target key start
LH: loop header
LB: loop body
LE: loop exit
PB: predicated region body
PF: predicated region fallthrough
CT: control target
= control target key end

     0   :  { %vm27_vm0 = vcmask 261120   ;;  %vm205_vm1 = vcmask 130048   ;;  %s3086_s18 = smov 80   ;;  %s3087_s19 = smov 96   ;;  %vm3094_vm3 = vmmov 0   ;;  %vm2267_vm4 = vcmask 1041409   ;;  %s3631_s0 = inlined_call_operand.vmem [shape: f32[2,16,32], index: 0, kind: input, shape index: {}]   ;;  %s3632_s5 = inlined_call_operand.vmem [shape: f32[20,128], index: 5, kind: input, shape index: {}]   ;;  %s3633_s3 = inlined_call_operand.vmem [shape: f32[3,32,256], index: 3, kind: input, shape index: {}]   ;;  %s3634_s1 = inlined_call_operand.vmem [shape: f32[16,16], index: 1, kind: input, shape index: {}]   ;;  %s3635_s4 = inlined_call_operand.vmem [shape: f32[2,128,32], index: 4, kind: input, shape index: {}]   ;;  %s3636_s2 = inlined_call_operand.vmem [shape: f32[8,16,1], index: 2, kind: input, shape index: {}]   ;;  %s3637_s6 = inlined_call_operand.vmem [shape: f32[8,1], index: 6, kind: output, shape index: {}]  }
   0x1   :  { %v25_v0 = vld [vmem:[%s3631_s0] sm:$0xff]  ;;  %v26_v1 = vld [vmem:[%s3631_s0 + $0x8] sm:$0xff]  ;;  %v2371_v26 = vld [vmem:[%s3631_s0 + $0x10] sm:$0xff]  ;;  %s3088_s20 = smov 112   ;;  %s3090_s25 = smov 32   ;;  %vm2269_vm5 = vcmask 1042434  }
   0x2   :  { %v28_v2 = vsel %vm27_vm0, %v25_v0, 0.0  ;;  %v31_v3 = vsel %vm27_vm0, %v26_v1, 0.0  ;;  %v2369_v21 = vld [vmem:[%s3632_s5] ss:$0 sm:$0xff]  ;;  %v2370_v23 = vld [vmem:[%s3632_s5 + $0x1] ss:$0 sm:$0xff]  ;;  %vm3205_vm2 = vmpackc.low %vm205_vm1, %vm205_vm1 }
   0x3   :  { %29 = vadd.xlane.f32.xlu0 %v28_v2  ;;  %v2372_v31 = vld [vmem:[%s3631_s0 + $0x18] sm:$0xff]  ;;  %v3160_v46 = vld [vmem:[%s3633_s3] sm:$0xff]  ;;  %v3165_v47 = vld [vmem:[%s3633_s3 + $0x10] sm:$0xff]  ;;  %s3091_s26 = smov 48   ;;  %vm2271_vm8 = vcmask 1043459   ;;  %vm2273_vm9 = vcmask 1044484  }
   0x4   :  { %v3170_v48 = vld [vmem:[%s3633_s3 + $0x20] sm:$0xff]  ;;  %v2973_v49 = vpack.i.bf16 %v3165_v47, %v3160_v46  ;;  %v2782_v50 = vpack.c.bf16 %v3165_v47, %v3160_v46  ;;  %v3179_v51 = vld [vmem:[%s3633_s3 + $0x30] sm:$0xff]  ;;  %vm2275_vm14 = vcmask 1045509  }
   0x5   :  { %v2786_v52 = vpack.c.bf16 %v3179_v51, %v3170_v48 }
   0x6   :  { %2783 = vmatprep.subr.bf16.mxu1 %v2782_v50 }
   0x7   :  { %32 = vadd.xlane.f32.xlu0 %v31_v3  ;;  %2785 = vmatpush3.bf16.msra.mxu1 %v2782_v50  ;;  %v2373_v3 = vld [vmem:[%s3632_s5 + $0x4] ss:$0 sm:$0xff] }
   0x8   :  { %2787 = vmatprep.subr.bf16.mxu1 %v2786_v52 }
   0xb   :  { %2789 = vmatpush3.bf16.msra.mxu1 %v2786_v52 }
  0x90   :  { %v30_v4 = vpop.xlane.xlu0 %29 }
  0x91   :  { %v35_v5 = vmul.f32 0.03125, %v30_v4 }
  0x93   :  { %v37_v6 = vsub.f32 %v25_v0, %v35_v5 }
  0x94   :  { %v33_v7 = vpop.xlane.xlu0 %32 }
  0x95   :  { %v36_v8 = vmul.f32 0.03125, %v33_v7  ;;  %v39_v9 = vmul.f32 %v37_v6, %v37_v6 }
  0x97   :  { %v38_v10 = vsub.f32 %v26_v1, %v36_v8  ;;  %v41_v11 = vsel %vm27_vm0, %v39_v9, 0.0 }
  0x98   :  { %42 = vadd.xlane.f32.xlu1 %v41_v11 }
  0x99   :  { %v40_v12 = vmul.f32 %v38_v10, %v38_v10 }
  0x9b   :  { %v44_v13 = vsel %vm27_vm0, %v40_v12, 0.0 }
  0x9c   :  { %45 = vadd.xlane.f32.xlu1 %v44_v13 }
 0x125   :  { %v43_v14 = vpop.xlane.xlu1 %42 }
 0x126   :  { %v47_v15 = vmul.f32 0.03125, %v43_v14 }
 0x128   :  { %v49_v16 = vadd.f32 1e-12, %v47_v15 }
 0x129   :  { %v46_v17 = vpop.xlane.xlu1 %45 }
 0x12a   :  { %3020 = vrsqrt.f32 %v49_v16  ;;  %v48_v18 = vmul.f32 0.03125, %v46_v17 }
 0x12c   :  { %v50_v19 = vadd.f32 1e-12, %v48_v18 }
 0x12e   :  { %3022 = vrsqrt.f32 %v50_v19 }
 0x134   :  { %v3021_v20 = vpop.eup %3020 }
 0x135   :  { %v53_v22 = vmul.f32 %v3021_v20, %v37_v6 }
 0x137   :  { %v59_v24 = vmul.f32 %v2369_v21, %v53_v22 }
 0x138   :  { %v3023_v25 = vpop.eup %3022 }
 0x139   :  { %v65_v27 = vadd.f32 %v2370_v23, %v59_v24  ;;  %v54_v28 = vmul.f32 %v3023_v25, %v38_v10  ;;  %v3228_v25 = vld [vmem:[%s3634_s1] sm:$0xff] }
 0x13b   :  { %v70_v29 = vadd.f32 %v2371_v26, %v65_v27  ;;  %v60_v30 = vmul.f32 %v2369_v21, %v54_v28 }
 0x13d   :  { %v72_v32 = vsel %vm27_vm0, %v70_v29, 0.0  ;;  %v66_v33 = vadd.f32 %v2370_v23, %v60_v30 }
 0x13e   :  { %73 = vadd.xlane.f32.xlu0 %v72_v32 }
 0x13f   :  { %v71_v34 = vadd.f32 %v2372_v31, %v66_v33 }
 0x141   :  { %v75_v35 = vsel %vm27_vm0, %v71_v34, 0.0 }
 0x142   :  { %76 = vadd.xlane.f32.xlu1 %v75_v35 }
 0x1cb   :  { %v74_v36 = vpop.xlane.xlu0 %73 }
 0x1cc   :  { %v78_v37 = vmul.f32 0.03125, %v74_v36 }
 0x1ce   :  { %v80_v38 = vsub.f32 %v70_v29, %v78_v37 }
 0x1cf   :  { %v77_v39 = vpop.xlane.xlu1 %76 }
 0x1d0   :  { %v79_v40 = vmul.f32 0.03125, %v77_v39  ;;  %v82_v41 = vmul.f32 %v80_v38, %v80_v38 }
 0x1d2   :  { %v81_v42 = vsub.f32 %v71_v34, %v79_v40  ;;  %v84_v43 = vsel %vm27_vm0, %v82_v41, 0.0 }
 0x1d3   :  { %85 = vadd.xlane.f32.xlu0 %v84_v43 }
 0x1d4   :  { %v83_v44 = vmul.f32 %v81_v42, %v81_v42 }
 0x1d6   :  { %v87_v45 = vsel %vm27_vm0, %v83_v44, 0.0 }
 0x1d7   :  { %88 = vadd.xlane.f32.xlu1 %v87_v45 }
 0x260   :  { %v86_v53 = vpop.xlane.xlu0 %85 }
 0x261   :  { %v90_v54 = vmul.f32 0.03125, %v86_v53 }
 0x263   :  { %v92_v55 = vadd.f32 1e-12, %v90_v54 }
 0x264   :  { %v89_v56 = vpop.xlane.xlu1 %88 }
 0x265   :  { %3024 = vrsqrt.f32 %v92_v55  ;;  %v91_v57 = vmul.f32 0.03125, %v89_v56 }
 0x267   :  { %v93_v58 = vadd.f32 1e-12, %v91_v57 }
 0x269   :  { %3026 = vrsqrt.f32 %v93_v58 }
 0x26f   :  { %v3025_v59 = vpop.eup %3024 }
 0x270   :  { %v96_v60 = vmul.f32 %v3025_v59, %v80_v38 }
 0x272   :  { %v98_v61 = vmul.f32 %v2369_v21, %v96_v60 }
 0x273   :  { %v3027_v62 = vpop.eup %3026 }
 0x274   :  { %v3183_v63 = vadd.f32 %v2370_v23, %v98_v61  ;;  %v97_v0 = vmul.f32 %v3027_v62, %v81_v42 }
 0x276   :  { %2581 = vmatprep.mubr.msk.f32.mxu1 %vm27_vm0, %v3183_v63  ;;  %v99_v1 = vmul.f32 %v2369_v21, %v97_v0  ;;  %v3223_v21 = vld [vmem:[%s3634_s1 + $0x8] sm:$0xff]  ;;  %s3089_s1 = smov 64  }
 0x278   :  { %v3187_v2 = vadd.f32 %v2370_v23, %v99_v1 }
 0x27a   :  { %2582 = vmatmul.mubr.msk.f32.vlgmr.msra.gmra.mrb[0].mxu1 %vm27_vm0, %v3187_v2 }
 0x34d   :  { %v2583_v4 = vpop.f32.mrb[0].mxu1 }
 0x34e   :  { %v195_v5 = vadd.f32 %v2583_v4, %v2373_v3  ;;  %v189_v6 = vpop.f32.mrb[1].mxu1 }
 0x34f   :  { %v190_v7 = vadd.f32 %v2373_v3, %v189_v6 }
 0x351   :  { %2588 = vmatprep.mubr.msk.f32.mxu1 %vm205_vm1, %v190_v7  ;;  %v3195_v8 = vpack.i.bf16 %v195_v5, %v190_v7 }
 0x353   :  { %2964 = vrot.lane.b32.xlu1 %v3195_v8, %s3086_s18  ;;  %2959 = vrot.lane.b32.xlu0 %v3195_v8, %s3087_s19 }
 0x357   :  { %497 = vrot.lane.b32.xlu1 %v190_v7, %s3088_s20 }
 0x35b   :  { %499 = vrot.lane.b32.xlu1 %v195_v5, %s3088_s20 }
 0x3c5   :  { %v2965_v9 = vpop.permute.xlu1 %2964  ;;  %v2960_v10 = vpop.permute.xlu0 %2959 }
 0x3c6   :  { %v2967_v11 = vunpack.i.h.bf16 %v2965_v9  ;;  %v2966_v12 = vunpack.i.l.bf16 %v2965_v9  ;;  %v2962_v13 = vunpack.i.h.bf16 %v2960_v10  ;;  %v2961_v14 = vunpack.i.l.bf16 %v2960_v10 }
 0x3c8   :  { %v2790_v16 = vpack.c.bf16 %v2962_v13, %v2961_v14  ;;  %v2804_v17 = vpack.c.bf16 %v2967_v11, %v2966_v12 }
 0x3c9   :  { %v498_v18 = vpop.permute.xlu1 %497 }
 0x3ca   :  { %2792 = vmatprep.subr.msk.bf16.mxu1 %vm3205_vm2, %v2790_v16  ;;  %2806 = vmatprep.subr.msk.bf16.mxu0 %vm3205_vm2, %v2804_v17 }
 0x3cb   :  { %2609 = vmatprep.mubr.msk.f32.mxu0 %vm205_vm1, %v498_v18  ;;  %2795 = vmatpush3.bf16.xpose.msk.msra.mxu1 %vm3205_vm2, %v2790_v16 }
 0x3cc   :  { %2809 = vmatpush3.bf16.xpose.msk.msra.mxu0 %vm3205_vm2, %v2804_v17 }
 0x3cd   :  { %v500_v19 = vpop.permute.xlu1 %499 }
 0x3d2   :  { %2589 = vmatmul.mubr.msk.f32.vlgmr.msra.gmra.mrb[2].mxu1 %vm205_vm1, %v195_v5 }
 0x3d3   :  { %2610 = vmatmul.mubr.msk.f32.vlgmr.msra.gmra.mrb[0].mxu0 %vm205_vm1, %v500_v19  ;;  %v2983_v19 = vpack.i.bf16 %v3179_v51, %v3170_v48 }
 0x4a5   :  { %v2590_v20 = vpop.f32.mrb[2].mxu1 }
 0x4a6   :  { %v290_v22 = vmul.f32 0.25, %v2590_v20  ;;  %v2611_v23 = vpop.f32.mrb[0].mxu0  ;;  %v280_v24 = vpop.f32.mrb[3].mxu1 }
 0x4a7   :  { %v289_v26 = vmul.f32 0.25, %v280_v24  ;;  %v579_v27 = vpop.f32.mrb[1].mxu0  ;;  %v589_v31 = vmul.f32 0.25, %v2611_v23 }
 0x4a8   :  { %v588_v28 = vmul.f32 0.25, %v579_v27  ;;  %v292_v29 = vadd.f32 %v290_v22, %v3223_v21 }
 0x4a9   :  { %v291_v30 = vadd.f32 %v289_v26, %v3228_v25  ;;  %v591_v36 = vadd.f32 %v589_v31, %v3223_v21 }
 0x4aa   :  { %v296_v32 = vsel %vm205_vm1, %v292_v29, -inf  ;;  %v590_v33 = vadd.f32 %v588_v28, %v3228_v25 }
 0x4ab   :  { %297 = vmax.xlane.f32.xlu1 %v296_v32  ;;  %v293_v34 = vsel %vm205_vm1, %v291_v30, -inf  ;;  %v595_v37 = vsel %vm205_vm1, %v591_v36, -inf  ;;  %v2384_v32 = vld [vmem:[%s3632_s5 + $0x5] ss:$0 sm:$0xff] }
 0x4ac   :  { %294 = vmax.xlane.f32.xlu0 %v293_v34  ;;  %v592_v35 = vsel %vm205_vm1, %v590_v33, -inf }
 0x4af   :  { %593 = vmax.xlane.f32.xlu1 %v592_v35 }
 0x4b3   :  { %596 = vmax.xlane.f32.xlu1 %v595_v37 }
 0x538   :  { %v298_v38 = vpop.xlane.xlu1 %297 }
 0x539   :  { %v300_v39 = vsub.f32 %v292_v29, %v298_v38  ;;  %v295_v40 = vpop.xlane.xlu0 %294 }
 0x53a   :  { %v299_v41 = vsub.f32 %v291_v30, %v295_v40 }
 0x53b   :  { %v303_v42 = vmul.f32 1.442695, %v300_v39 }
 0x53c   :  { %v301_v43 = vmul.f32 1.442695, %v299_v41  ;;  %v594_v44 = vpop.xlane.xlu1 %593 }
 0x53d   :  { %3028 = vpow2.f32 %v303_v42  ;;  %v598_v45 = vsub.f32 %v590_v33, %v594_v44 }
 0x53e   :  { %3030 = vpow2.f32 %v301_v43 }
 0x53f   :  { %v600_v53 = vmul.f32 1.442695, %v598_v45 }
 0x540   :  { %v597_v50 = vpop.xlane.xlu1 %596 }
 0x541   :  { %v599_v52 = vsub.f32 %v591_v36, %v597_v50 }
 0x543   :  { %v602_v54 = vmul.f32 1.442695, %v599_v52 }
 0x545   :  { %3032 = vpow2.f32 %v602_v54 }
 0x546   :  { %3034 = vpow2.f32 %v600_v53 }
 0x547   :  { %v3029_v55 = vpop.eup %3028 }
 0x548   :  { %v308_v56 = vsel %vm205_vm1, %v3029_v55, 0.0  ;;  %v3031_v57 = vpop.eup %3030 }
 0x549   :  { %309 = vadd.xlane.f32.xlu0 %v308_v56  ;;  %v305_v58 = vsel %vm205_vm1, %v3031_v57, 0.0 }
 0x54d   :  { %306 = vadd.xlane.f32.xlu0 %v305_v58  ;;  %v111_v58 = vld [vmem:[%s3633_s3 + $0x38] sm:$0xff] }
 0x54f   :  { %v3033_v59 = vpop.eup %3032 }
 0x550   :  { %v607_v60 = vsel %vm205_vm1, %v3033_v59, 0.0  ;;  %v3035_v61 = vpop.eup %3034 }
 0x551   :  { %608 = vadd.xlane.f32.xlu1 %v607_v60  ;;  %v604_v62 = vsel %vm205_vm1, %v3035_v61, 0.0  ;;  %v938_v60 = vld [vmem:[%s3635_s4] sm:$0xff] }
 0x555   :  { %605 = vadd.xlane.f32.xlu1 %v604_v62 }
 0x563   :  { %2969 = vrot.lane.b32.xlu0 %v3195_v8, %s3089_s1 }
 0x566   :  { %2974 = vrot.lane.b32.xlu1 %v2973_v49, %s3090_s25 }
 0x567   :  { %2979 = vrot.lane.b32.xlu0 %v3195_v8, %s3091_s26 }
 0x56b   :  { %2984 = vrot.lane.b32.xlu0 %v2983_v19, %s3090_s25  ;;  %v943_v19 = vld [vmem:[%s3635_s4 + $0x28] sm:$0xff] }
 0x5d6   :  { %v310_v0 = vpop.xlane.xlu0 %309 }
 0x5d7   :  { %3036 = vrcp.f32 %v310_v0 }
 0x5da   :  { %v307_v1 = vpop.xlane.xlu0 %306 }
 0x5db   :  { %3038 = vrcp.f32 %v307_v1 }
 0x5de   :  { %v609_v3 = vpop.xlane.xlu1 %608  ;;  %v2970_v4 = vpop.permute.xlu0 %2969 }
 0x5df   :  { %v2972_v5 = vunpack.i.h.bf16 %v2970_v4  ;;  %v2971_v6 = vunpack.i.l.bf16 %v2970_v4 }
 0x5e1   :  { %v2796_v7 = vpack.c.bf16 %v2972_v5, %v2971_v6  ;;  %v3037_v10 = vpop.eup %3036 }
 0x5e2   :  { %v606_v9 = vpop.xlane.xlu1 %605  ;;  %v2980_v11 = vpop.permute.xlu0 %2979  ;;  %v314_v47 = vmul.f32 %v3037_v10, %v3029_v55  ;;  %v107_v55 = vld [vmem:[%s3633_s3 + $0x18] sm:$0xff] }
 0x5e3   :  { %2797 = vmatprep.subr.bf16.mxu1 %v2796_v7  ;;  %v2982_v13 = vunpack.i.h.bf16 %v2980_v11  ;;  %v2981_v8 = vunpack.i.l.bf16 %v2980_v11  ;;  %3040 = vrcp.f32 %v606_v9  ;;  %v2393_v9 = vld [vmem:[%s3632_s5 + $0x6] ss:$0 sm:$0xff]  ;;  %v2394_v11 = vld [vmem:[%s3632_s5 + $0x7] ss:$0 sm:$0xff] }
 0x5e4   :  { %2799 = vmatpush3.bf16.msra.mxu1 %v2796_v7  ;;  %3042 = vrcp.f32 %v609_v3 }
 0x5e5   :  { %v3039_v46 = vpop.eup %3038  ;;  %v2810_v18 = vpack.c.bf16 %v2982_v13, %v2981_v8 }
 0x5e6   :  { %v2975_v49 = vpop.permute.xlu1 %2974  ;;  %v313_v12 = vmul.f32 %v3039_v46, %v3031_v57  ;;  %v2985_v20 = vpop.permute.xlu0 %2984  ;;  %v109_v57 = vld [vmem:[%s3633_s3 + $0x28] sm:$0xff] }
 0x5e7   :  { %v2977_v14 = vunpack.i.h.bf16 %v2975_v49  ;;  %v2976_v16 = vunpack.i.l.bf16 %v2975_v49  ;;  %v2987_v22 = vunpack.i.h.bf16 %v2985_v20  ;;  %v2986_v23 = vunpack.i.l.bf16 %v2985_v20 }
 0x5e8   :  { %2595 = vmatprep.mubr.msk.f32.mxu1 %vm205_vm1, %v313_v12 }
 0x5e9   :  { %v2800_v17 = vpack.c.bf16 %v2977_v14, %v2976_v16  ;;  %2596 = vmatmul.mubr.msk.f32.vlgmr.msra.gmra.mrb[4].mxu1 %vm205_vm1, %v314_v47  ;;  %v2814_v28 = vpack.c.bf16 %v2987_v22, %v2986_v23  ;;  %v940_v14 = vld [vmem:[%s3635_s4 + $0x10] sm:$0xff]  ;;  %v941_v16 = vld [vmem:[%s3635_s4 + $0x18] sm:$0xff] }
 0x5ea   :  { %v944_v22 = vld [vmem:[%s3635_s4 + $0x30] sm:$0xff]  ;;  %v945_v23 = vld [vmem:[%s3635_s4 + $0x38] sm:$0xff] }
 0x5eb   :  { %2801 = vmatprep.subr.bf16.mxu1 %v2800_v17 }
 0x5ec   :  { %2803 = vmatpush3.bf16.msra.mxu1 %v2800_v17  ;;  %v2830_v17 = vpack.c.bf16 %v941_v16, %v940_v14 }
 0x5ed   :  { %2811 = vmatprep.subr.bf16.mxu1 %v2810_v18  ;;  %v3041_v24 = vpop.eup %3040 }
 0x5ee   :  { %v3043_v29 = vpop.eup %3042  ;;  %v612_v30 = vmul.f32 %v3041_v24, %v3035_v61  ;;  %v939_v61 = vld [vmem:[%s3635_s4 + $0x8] sm:$0xff]  ;;  %v2838_v24 = vpack.c.bf16 %v945_v23, %v944_v22  ;;  %v3370_v22 = vld [vmem:[%s3633_s3 + $0x70] sm:$0xff] }
 0x5ef   :  { %v613_v48 = vmul.f32 %v3043_v29, %v3033_v59  ;;  %v2822_v59 = vpack.c.bf16 %v111_v58, %v109_v57  ;;  %v2826_v62 = vpack.c.bf16 %v939_v61, %v938_v60  ;;  %v948_v29 = vld [vmem:[%s3635_s4 + $0x50] sm:$0xff] }
 0x6bc   :  { %v2597_v26 = vpop.f32.mrb[4].mxu1 }
 0x6bd   :  { %v393_v27 = vpop.f32.mrb[5].mxu1 }
 0x6be   :  { %2602 = vmatprep.mubr.msk.f32.mxu1 %vm205_vm1, %v393_v27  ;;  %v947_v27 = vld [vmem:[%s3635_s4 + $0x48] sm:$0xff] }
 0x6bf   :  { %2603 = vmatmul.mubr.msk.f32.vlgmr.msra.gmra.mrb[6].mxu1 %vm205_vm1, %v2597_v26  ;;  %v946_v26 = vld [vmem:[%s3635_s4 + $0x40] sm:$0xff] }
 0x6c0   :  { %2813 = vmatpush3.bf16.msra.mxu1 %v2810_v18  ;;  %2616 = vmatprep.mubr.msk.f32.mxu1 %vm205_vm1, %v612_v30  ;;  %v942_v18 = vld [vmem:[%s3635_s4 + $0x20] sm:$0xff]  ;;  %v949_v30 = vld [vmem:[%s3635_s4 + $0x58] sm:$0xff] }
 0x6c1   :  { %2815 = vmatprep.subr.bf16.mxu1 %v2814_v28  ;;  %v2834_v20 = vpack.c.bf16 %v943_v19, %v942_v18  ;;  %v2403_v18 = vld [vmem:[%s3633_s3 + $0x50] sm:$0xff] }
 0x6c3   :  { %2617 = vmatmul.mubr.msk.f32.vlgmr.msra.gmra.mrb[8].mxu1 %vm205_vm1, %v613_v48  ;;  %v2846_v48 = vpack.c.bf16 %v949_v30, %v948_v29 }
 0x6c4   :  { %2817 = vmatpush3.bf16.msra.mxu1 %v2814_v28  ;;  %v2842_v28 = vpack.c.bf16 %v947_v27, %v946_v26 }
 0x6c5   :  { %2827 = vmatprep.subr.bf16.mxu1 %v2826_v62 }
 0x796   :  { %v2618_v51 = vpop.f32.mrb[8].mxu1 }
 0x797   :  { %v692_v31 = vpop.f32.mrb[9].mxu1 }
 0x798   :  { %2623 = vmatprep.mubr.msk.f32.mxu1 %vm205_vm1, %v692_v31  ;;  %v951_v31 = vld [vmem:[%s3635_s4 + $0x68] sm:$0xff] }
 0x799   :  { %2624 = vmatmul.mubr.msk.f32.vlgmr.msra.gmra.mrb[6].mxu1 %vm205_vm1, %v2618_v51  ;;  %v950_v51 = vld [vmem:[%s3635_s4 + $0x60] sm:$0xff] }
 0x79a   :  { %2829 = vmatpush3.bf16.msra.mxu1 %v2826_v62  ;;  %v2398_v62 = vld [vmem:[%s3632_s5 + $0x9] ss:$0 sm:$0xff] }
 0x79b   :  { %2831 = vmatprep.subr.bf16.mxu1 %v2830_v17 }
 0x79e   :  { %2833 = vmatpush3.bf16.msra.mxu1 %v2830_v17 }
 0x79f   :  { %2835 = vmatprep.subr.bf16.mxu1 %v2834_v20 }
 0x7a2   :  { %2837 = vmatpush3.bf16.msra.mxu1 %v2834_v20  ;;  %v3365_v20 = vld [vmem:[%s3633_s3 + $0x60] sm:$0xff] }
 0x7a3   :  { %2839 = vmatprep.subr.bf16.mxu1 %v2838_v24  ;;  %v2862_v23 = vpack.c.bf16 %v3370_v22, %v3365_v20 }
 0x7a6   :  { %2841 = vmatpush3.bf16.msra.mxu1 %v2838_v24 }
 0x7a7   :  { %2843 = vmatprep.subr.bf16.mxu1 %v2842_v28 }
 0x7aa   :  { %2845 = vmatpush3.bf16.msra.mxu1 %v2842_v28 }
 0x7ab   :  { %2847 = vmatprep.subr.bf16.mxu1 %v2846_v48 }
 0x7ae   :  { %2849 = vmatpush3.bf16.msra.mxu1 %v2846_v48 }
 0x86c   :  { %v2625_v33 = vpop.f32.mrb[6].mxu1 }
 0x86d   :  { %v2940_v34 = vadd.f32 %v2625_v33, %v2384_v32  ;;  %v781_v35 = vpop.f32.mrb[7].mxu1  ;;  %v952_v33 = vld [vmem:[%s3635_s4 + $0x70] sm:$0xff] }
 0x86e   :  { %v2941_v36 = vadd.f32 %v2384_v32, %v781_v35  ;;  %v2850_v32 = vpack.c.bf16 %v951_v31, %v950_v51  ;;  %v2399_v51 = vld [vmem:[%s3632_s5 + $0xa] ss:$0 sm:$0xff] }
 0x86f   :  { %v793_v37 = vadd.f32 %v2940_v34, %v3187_v2  ;;  %v953_v34 = vld [vmem:[%s3635_s4 + $0x78] sm:$0xff] }
 0x870   :  { %v792_v38 = vadd.f32 %v2941_v36, %v3183_v63  ;;  %v105_v63 = vld [vmem:[%s3633_s3 + $0x8] sm:$0xff]  ;;  %2851 = vmatprep.subr.bf16.mxu1 %v2850_v32  ;;  %v2854_v35 = vpack.c.bf16 %v953_v34, %v952_v33 }
 0x871   :  { %v799_v39 = vsel %vm27_vm0, %v793_v37, 0.0  ;;  %v2818_v56 = vpack.c.bf16 %v107_v55, %v105_v63  ;;  %2853 = vmatpush3.bf16.msra.mxu1 %v2850_v32  ;;  %v2395_v36 = vld [vmem:[%s3632_s5 + $0x8] ss:$0 sm:$0xff]  ;;  %v2400_v34 = vld [vmem:[%s3632_s5 + $0xb] ss:$0 sm:$0xff] }
 0x872   :  { %800 = vadd.xlane.f32.xlu1 %v799_v39  ;;  %v796_v40 = vsel %vm27_vm0, %v792_v38, 0.0  ;;  %2855 = vmatprep.subr.bf16.mxu1 %v2854_v35 }
 0x873   :  { %797 = vadd.xlane.f32.xlu0 %v796_v40  ;;  %2819 = vmatprep.subr.bf16.mxu0 %v2818_v56 }
 0x874   :  { %2821 = vmatpush3.bf16.msra.mxu0 %v2818_v56 }
 0x875   :  { %2823 = vmatprep.subr.bf16.mxu0 %v2822_v59  ;;  %2857 = vmatpush3.bf16.msra.mxu1 %v2854_v35 }
 0x878   :  { %2825 = vmatpush3.bf16.msra.mxu0 %v2822_v59 }
 0x8ff   :  { %v801_v41 = vpop.xlane.xlu1 %800 }
 0x900   :  { %v803_v42 = vmul.f32 0.03125, %v801_v41  ;;  %v798_v43 = vpop.xlane.xlu0 %797 }
 0x901   :  { %v802_v44 = vmul.f32 0.03125, %v798_v43 }
 0x902   :  { %v805_v45 = vsub.f32 %v793_v37, %v803_v42 }
 0x903   :  { %v804_v50 = vsub.f32 %v792_v38, %v802_v44 }
 0x904   :  { %v807_v54 = vmul.f32 %v805_v45, %v805_v45 }
 0x905   :  { %v806_v52 = vmul.f32 %v804_v50, %v804_v50 }
 0x906   :  { %v811_v2 = vsel %vm27_vm0, %v807_v54, 0.0 }
 0x907   :  { %v808_v53 = vsel %vm27_vm0, %v806_v52, 0.0 }
 0x908   :  { %809 = vadd.xlane.f32.xlu0 %v808_v53 }
 0x90c   :  { %812 = vadd.xlane.f32.xlu0 %v811_v2 }
 0x995   :  { %v810_v0 = vpop.xlane.xlu0 %809 }
 0x996   :  { %v814_v1 = vmul.f32 0.03125, %v810_v0 }
 0x998   :  { %v816_v3 = vadd.f32 1e-12, %v814_v1 }
 0x999   :  { %v813_v4 = vpop.xlane.xlu0 %812 }
 0x99a   :  { %3044 = vrsqrt.f32 %v816_v3  ;;  %v815_v5 = vmul.f32 0.03125, %v813_v4 }
 0x99c   :  { %v817_v6 = vadd.f32 1e-12, %v815_v5 }
 0x99e   :  { %3046 = vrsqrt.f32 %v817_v6 }
 0x9a4   :  { %v3045_v7 = vpop.eup %3044 }
 0x9a5   :  { %v820_v10 = vmul.f32 %v3045_v7, %v804_v50 }
 0x9a7   :  { %v826_v46 = vmul.f32 %v2393_v9, %v820_v10 }
 0x9a8   :  { %v3047_v47 = vpop.eup %3046 }
 0x9a9   :  { %v821_v49 = vmul.f32 %v3047_v47, %v805_v45  ;;  %v3294_v12 = vadd.f32 %v2394_v11, %v826_v46 }
 0x9ab   :  { %v827_v13 = vmul.f32 %v2393_v9, %v821_v49  ;;  %2634 = vmatprep.mubr.msk.f32.mxu0 %vm27_vm0, %v3294_v12 }
 0x9ad   :  { %v3298_v8 = vadd.f32 %v2394_v11, %v827_v13 }
 0x9af   :  { %2635 = vmatmul.mubr.msk.f32.vlgmr.msra.gmra.mrb[2].mxu0 %vm27_vm0, %v3298_v8 }
 0xa82   :  { %v2636_v37 = vpop.f32.mrb[2].mxu0 }
 0xa83   :  { %v917_v38 = vadd.f32 %v2636_v37, %v2395_v36  ;;  %v911_v39 = vpop.f32.mrb[3].mxu0 }
 0xa84   :  { %v912_v40 = vadd.f32 %v2395_v36, %v911_v39  ;;  %v2409_v39 = vld [vmem:[%s3632_s5 + $0xc] ss:$0 sm:$0xff] }
 0xa85   :  { %v923_v41 = vmul.f32 0.044715, %v917_v38  ;;  %v921_v59 = vmul.f32 0.5, %v917_v38 }
 0xa86   :  { %v922_v42 = vmul.f32 0.044715, %v912_v40  ;;  %v920_v57 = vmul.f32 0.5, %v912_v40 }
 0xa87   :  { %v925_v43 = vmul.f32 %v923_v41, %v917_v38 }
 0xa88   :  { %v924_v44 = vmul.f32 %v922_v42, %v912_v40 }
 0xa89   :  { %v927_v45 = vmul.f32 %v925_v43, %v917_v38 }
 0xa8a   :  { %v926_v50 = vmul.f32 %v924_v44, %v912_v40 }
 0xa8b   :  { %v929_v52 = vadd.f32 %v927_v45, %v917_v38 }
 0xa8c   :  { %v928_v53 = vadd.f32 %v926_v50, %v912_v40 }
 0xa8d   :  { %v931_v54 = vmul.f32 0.7978846, %v929_v52 }
 0xa8e   :  { %v930_v2 = vmul.f32 0.7978846, %v928_v53 }
 0xa8f   :  { %3048 = vtanh.f32 %v931_v54 }
 0xa90   :  { %3050 = vtanh.f32 %v930_v2 }
 0xa99   :  { %v3049_v63 = vpop.eup %3048 }
 0xa9a   :  { %v3051_v55 = vpop.eup %3050  ;;  %v935_v56 = vadd.f32 1.0, %v3049_v63 }
 0xa9b   :  { %v934_v58 = vadd.f32 1.0, %v3051_v55 }
 0xa9c   :  { %v937_v61 = vmul.f32 %v935_v56, %v921_v59 }
 0xa9d   :  { %v936_v60 = vmul.f32 %v934_v58, %v920_v57 }
 0xa9f   :  { %2669 = vmatprep.mubr.f32.mxu1 %v936_v60 }
 0xaa0   :  { %2670 = vmatmul.mubr.f32.vlgmr.msra.gmra.mrb[10].mxu1 %v937_v61 }
 0xb73   :  { %v2671_v0 = vpop.f32.mrb[10].mxu1 }
 0xb74   :  { %v1031_v1 = vadd.f32 %v2671_v0, %v2398_v62  ;;  %v1025_v3 = vpop.f32.mrb[11].mxu1 }
 0xb75   :  { %v1026_v4 = vadd.f32 %v2398_v62, %v1025_v3 }
 0xb76   :  { %v1035_v5 = vadd.f32 %v1031_v1, %v3298_v8 }
 0xb77   :  { %v1034_v6 = vadd.f32 %v1026_v4, %v3294_v12  ;;  %v2401_v12 = vld [vmem:[%s3633_s3 + $0x40] sm:$0xff] }
 0xb78   :  { %v1041_v7 = vsel %vm27_vm0, %v1035_v5, 0.0  ;;  %v2858_v19 = vpack.c.bf16 %v2403_v18, %v2401_v12  ;;  %v2998_v45 = vpack.i.bf16 %v2403_v18, %v2401_v12 }
 0xb79   :  { %1042 = vadd.xlane.f32.xlu1 %v1041_v7  ;;  %v1038_v9 = vsel %vm27_vm0, %v1034_v6, 0.0 }
 0xb7a   :  { %1039 = vadd.xlane.f32.xlu0 %v1038_v9  ;;  %2859 = vmatprep.subr.bf16.mxu0 %v2858_v19 }
 0xb7b   :  { %2861 = vmatpush3.bf16.msra.mxu0 %v2858_v19 }
 0xb7c   :  { %2863 = vmatprep.subr.bf16.mxu0 %v2862_v23 }
 0xb7f   :  { %2865 = vmatpush3.bf16.msra.mxu0 %v2862_v23 }
 0xc06   :  { %v1043_v10 = vpop.xlane.xlu1 %1042 }
 0xc07   :  { %v1045_v11 = vmul.f32 0.03125, %v1043_v10  ;;  %v1040_v46 = vpop.xlane.xlu0 %1039 }
 0xc08   :  { %v1044_v47 = vmul.f32 0.03125, %v1040_v46 }
 0xc09   :  { %v1047_v49 = vsub.f32 %v1035_v5, %v1045_v11 }
 0xc0a   :  { %v1046_v13 = vsub.f32 %v1034_v6, %v1044_v47 }
 0xc0b   :  { %v1049_v14 = vmul.f32 %v1047_v49, %v1047_v49 }
 0xc0c   :  { %v1048_v16 = vmul.f32 %v1046_v13, %v1046_v13 }
 0xc0d   :  { %v1053_v17 = vsel %vm27_vm0, %v1049_v14, 0.0 }
 0xc0e   :  { %1054 = vadd.xlane.f32.xlu1 %v1053_v17  ;;  %v1050_v8 = vsel %vm27_vm0, %v1048_v16, 0.0 }
 0xc0f   :  { %1051 = vadd.xlane.f32.xlu0 %v1050_v8 }
 0xc9b   :  { %v1055_v24 = vpop.xlane.xlu1 %1054 }
 0xc9c   :  { %v1057_v26 = vmul.f32 0.03125, %v1055_v24  ;;  %v1052_v27 = vpop.xlane.xlu0 %1051 }
 0xc9d   :  { %v1056_v28 = vmul.f32 0.03125, %v1052_v27 }
 0xc9e   :  { %v1059_v29 = vadd.f32 1e-12, %v1057_v26 }
 0xc9f   :  { %v1058_v30 = vadd.f32 1e-12, %v1056_v28 }
 0xca0   :  { %3052 = vrsqrt.f32 %v1059_v29 }
 0xca1   :  { %3054 = vrsqrt.f32 %v1058_v30 }
 0xcaa   :  { %v3053_v48 = vpop.eup %3052 }
 0xcab   :  { %v3055_v31 = vpop.eup %3054  ;;  %v1063_v32 = vmul.f32 %v3053_v48, %v1047_v49 }
 0xcac   :  { %v1062_v33 = vmul.f32 %v3055_v31, %v1046_v13 }
 0xcad   :  { %v1069_v35 = vmul.f32 %v2399_v51, %v1063_v32 }
 0xcae   :  { %v1068_v36 = vmul.f32 %v2399_v51, %v1062_v33 }
 0xcaf   :  { %v3382_v38 = vadd.f32 %v2400_v34, %v1069_v35 }
 0xcb0   :  { %v3380_v37 = vadd.f32 %v2400_v34, %v1068_v36 }
 0xcb2   :  { %2680 = vmatprep.mubr.msk.f32.mxu0 %vm27_vm0, %v3380_v37 }
 0xcb3   :  { %2681 = vmatmul.mubr.msk.f32.vlgmr.msra.gmra.mrb[4].mxu0 %vm27_vm0, %v3382_v38 }
 0xd86   :  { %v2682_v40 = vpop.f32.mrb[4].mxu0 }
 0xd87   :  { %v1168_v41 = vadd.f32 %v2682_v40, %v2409_v39  ;;  %v1162_v42 = vpop.f32.mrb[5].mxu0 }
 0xd88   :  { %v1163_v43 = vadd.f32 %v2409_v39, %v1162_v42 }
 0xd8a   :  { %2687 = vmatprep.mubr.msk.f32.mxu0 %vm205_vm1, %v1163_v43  ;;  %v3392_v44 = vpack.i.bf16 %v1168_v41, %v1163_v43 }
 0xd8c   :  { %2989 = vrot.lane.b32.xlu0 %v3392_v44, %s3087_s19 }
 0xd90   :  { %2999 = vrot.lane.b32.xlu0 %v2998_v45, %s3090_s25 }
 0xd94   :  { %3004 = vrot.lane.b32.xlu0 %v3392_v44, %s3086_s18 }
 0xd98   :  { %1469 = vrot.lane.b32.xlu0 %v1163_v43, %s3088_s20 }
 0xdfe   :  { %v2990_v50 = vpop.permute.xlu0 %2989 }
 0xdff   :  { %v2992_v52 = vunpack.i.h.bf16 %v2990_v50  ;;  %v2991_v53 = vunpack.i.l.bf16 %v2990_v50 }
 0xe01   :  { %v2866_v54 = vpack.c.bf16 %v2992_v52, %v2991_v53 }
 0xe02   :  { %v3000_v46 = vpop.permute.xlu0 %2999 }
 0xe03   :  { %2868 = vmatprep.subr.msk.bf16.mxu0 %vm3205_vm2, %v2866_v54  ;;  %v3002_v47 = vunpack.i.h.bf16 %v3000_v46  ;;  %v3001_v49 = vunpack.i.l.bf16 %v3000_v46 }
 0xe04   :  { %2871 = vmatpush3.bf16.xpose.msk.msra.mxu0 %vm3205_vm2, %v2866_v54  ;;  %v3013_v54 = vpack.i.bf16 %v3370_v22, %v3365_v20 }
 0xe05   :  { %v2876_v17 = vpack.c.bf16 %v3002_v47, %v3001_v49 }
 0xe06   :  { %v3005_v12 = vpop.permute.xlu0 %3004 }
 0xe07   :  { %v3007_v23 = vunpack.i.h.bf16 %v3005_v12  ;;  %v3006_v24 = vunpack.i.l.bf16 %v3005_v12 }
 0xe09   :  { %v2880_v28 = vpack.c.bf16 %v3007_v23, %v3006_v24  ;;  %v2404_v23 = vld [vmem:[%s3633_s3 + $0x58] sm:$0xff] }
 0xe0a   :  { %v1470_v48 = vpop.permute.xlu0 %1469 }
 0xe0b   :  { %2688 = vmatmul.mubr.msk.f32.vlgmr.msra.gmra.mrb[6].mxu0 %vm205_vm1, %v1168_v41 }
 0xede   :  { %v2689_v2 = vpop.f32.mrb[6].mxu0 }
 0xedf   :  { %v1252_v63 = vpop.f32.mrb[7].mxu0  ;;  %v1262_v55 = vmul.f32 0.25, %v2689_v2 }
 0xee0   :  { %v1261_v56 = vmul.f32 0.25, %v1252_v63 }
 0xee1   :  { %v1264_v59 = vadd.f32 %v1262_v55, %v3223_v21 }
 0xee2   :  { %v1263_v57 = vadd.f32 %v1261_v56, %v3228_v25 }
 0xee3   :  { %v1268_v60 = vsel %vm205_vm1, %v1264_v59, -inf }
 0xee4   :  { %v1265_v58 = vsel %vm205_vm1, %v1263_v57, -inf }
 0xee5   :  { %1266 = vmax.xlane.f32.xlu1 %v1265_v58 }
 0xee9   :  { %1269 = vmax.xlane.f32.xlu1 %v1268_v60 }
 0xf72   :  { %v1267_v61 = vpop.xlane.xlu1 %1266 }
 0xf73   :  { %v1271_v62 = vsub.f32 %v1263_v57, %v1267_v61 }
 0xf75   :  { %v1273_v3 = vmul.f32 1.442695, %v1271_v62 }
 0xf76   :  { %v1270_v0 = vpop.xlane.xlu1 %1269 }
 0xf77   :  { %v1272_v1 = vsub.f32 %v1264_v59, %v1270_v0 }
 0xf79   :  { %v1275_v4 = vmul.f32 1.442695, %v1272_v1 }
 0xf7b   :  { %3056 = vpow2.f32 %v1275_v4  ;;  %v2420_v4 = vld [vmem:[%s3632_s5 + $0xd] ss:$0 sm:$0xff] }
 0xf7c   :  { %3058 = vpow2.f32 %v1273_v3 }
 0xf85   :  { %v3057_v5 = vpop.eup %3056 }
 0xf86   :  { %v1280_v6 = vsel %vm205_vm1, %v3057_v5, 0.0  ;;  %v3059_v7 = vpop.eup %3058 }
 0xf87   :  { %1281 = vadd.xlane.f32.xlu1 %v1280_v6  ;;  %v1277_v9 = vsel %vm205_vm1, %v3059_v7, 0.0 }
 0xf8b   :  { %1278 = vadd.xlane.f32.xlu1 %v1277_v9 }
 0xf9c   :  { %2994 = vrot.lane.b32.xlu1 %v3392_v44, %s3089_s1 }
 0xfa0   :  { %1471 = vrot.lane.b32.xlu1 %v1168_v41, %s3088_s20 }
0x1014   :  { %v1282_v10 = vpop.xlane.xlu1 %1281 }
0x1015   :  { %3060 = vrcp.f32 %v1282_v10 }
0x1018   :  { %v1279_v11 = vpop.xlane.xlu1 %1278 }
0x1019   :  { %3062 = vrcp.f32 %v1279_v11 }
0x101c   :  { %v2995_v13 = vpop.permute.xlu1 %2994 }
0x101d   :  { %v2997_v14 = vunpack.i.h.bf16 %v2995_v13  ;;  %v2996_v16 = vunpack.i.l.bf16 %v2995_v13 }
0x101f   :  { %v2872_v8 = vpack.c.bf16 %v2997_v14, %v2996_v16  ;;  %v3061_v18 = vpop.eup %3060 }
0x1020   :  { %v1286_v27 = vmul.f32 %v3061_v18, %v3057_v5  ;;  %v1472_v51 = vpop.permute.xlu1 %1471 }
0x1021   :  { %2873 = vmatprep.subr.bf16.mxu0 %v2872_v8 }
0x1022   :  { %2875 = vmatpush3.bf16.msra.mxu0 %v2872_v8 }
0x1023   :  { %v3063_v19 = vpop.eup %3062  ;;  %2877 = vmatprep.subr.bf16.mxu0 %v2876_v17 }
0x1024   :  { %v1285_v26 = vmul.f32 %v3063_v19, %v3059_v7 }
0x1026   :  { %2694 = vmatprep.mubr.msk.f32.mxu0 %vm205_vm1, %v1285_v26  ;;  %v2406_v26 = vld [vmem:[%s3633_s3 + $0x68] sm:$0xff] }
0x1027   :  { %2695 = vmatmul.mubr.msk.f32.vlgmr.msra.gmra.mrb[8].mxu0 %vm205_vm1, %v1286_v27  ;;  %v2408_v27 = vld [vmem:[%s3633_s3 + $0x78] sm:$0xff] }
0x1028   :  { %2879 = vmatpush3.bf16.msra.mxu0 %v2876_v17 }
0x1029   :  { %2882 = vmatprep.subr.msk.bf16.mxu0 %vm3205_vm2, %v2880_v28 }
0x10fa   :  { %v2696_v29 = vpop.f32.mrb[8].mxu0 }
0x10fb   :  { %v1365_v30 = vpop.f32.mrb[9].mxu0 }
0x10fc   :  { %2701 = vmatprep.mubr.msk.f32.mxu0 %vm205_vm1, %v1365_v30  ;;  %v2435_v30 = vld [vmem:[%s3635_s4 + $0x88] sm:$0xff] }
0x10fd   :  { %2702 = vmatmul.mubr.msk.f32.vlgmr.msra.gmra.mrb[10].mxu0 %vm205_vm1, %v2696_v29  ;;  %v2434_v29 = vld [vmem:[%s3635_s4 + $0x80] sm:$0xff] }
0x10fe   :  { %2885 = vmatpush3.bf16.xpose.msk.msra.mxu0 %vm3205_vm2, %v2880_v28  ;;  %2708 = vmatprep.mubr.msk.f32.mxu0 %vm205_vm1, %v1470_v48  ;;  %v2898_v28 = vpack.c.bf16 %v2408_v27, %v2406_v26  ;;  %v2902_v48 = vpack.c.bf16 %v2435_v30, %v2434_v29  ;;  %v2450_v29 = vld [vmem:[%s3632_s5 + $0x11] ss:$0 sm:$0xff]  ;;  %vm2277_vm2 = vcmask 1046534  }
0x1105   :  { %2709 = vmatmul.mubr.msk.f32.vlgmr.msra.gmra.mrb[12].mxu0 %vm205_vm1, %v1472_v51 }
0x11d8   :  { %v2710_v31 = vpop.f32.mrb[12].mxu0 }
0x11d9   :  { %v1561_v32 = vmul.f32 0.25, %v2710_v31  ;;  %v1551_v33 = vpop.f32.mrb[13].mxu0 }
0x11da   :  { %v1560_v34 = vmul.f32 0.25, %v1551_v33 }
0x11db   :  { %v1563_v35 = vadd.f32 %v1561_v32, %v3223_v21 }
0x11dc   :  { %v1562_v36 = vadd.f32 %v1560_v34, %v3228_v25 }
0x11dd   :  { %v1567_v39 = vsel %vm205_vm1, %v1563_v35, -inf }
0x11de   :  { %1568 = vmax.xlane.f32.xlu1 %v1567_v39  ;;  %v1564_v40 = vsel %vm205_vm1, %v1562_v36, -inf  ;;  %v2429_v39 = vld [vmem:[%s3632_s5 + $0xe] ss:$0 sm:$0xff] }
0x11df   :  { %1565 = vmax.xlane.f32.xlu0 %v1564_v40 }
0x11ef   :  { %3014 = vrot.lane.b32.xlu1 %v3013_v54, %s3090_s25  ;;  %v2438_v54 = vld [vmem:[%s3635_s4 + $0xa0] sm:$0xff] }
0x126b   :  { %v1569_v15 = vpop.xlane.xlu1 %1568 }
0x126c   :  { %v1571_v41 = vsub.f32 %v1563_v35, %v1569_v15  ;;  %v1566_v42 = vpop.xlane.xlu0 %1565 }
0x126d   :  { %v1570_v43 = vsub.f32 %v1562_v36, %v1566_v42  ;;  %v2430_v42 = vld [vmem:[%s3632_s5 + $0xf] ss:$0 sm:$0xff] }
0x126e   :  { %v1574_v45 = vmul.f32 1.442695, %v1571_v41 }
0x126f   :  { %v1572_v50 = vmul.f32 1.442695, %v1570_v43  ;;  %v3015_v55 = vpop.permute.xlu1 %3014 }
0x1270   :  { %3064 = vpow2.f32 %v1574_v45  ;;  %v3017_v57 = vunpack.i.h.bf16 %v3015_v55  ;;  %v3016_v58 = vunpack.i.l.bf16 %v3015_v55  ;;  %v2440_v55 = vld [vmem:[%s3635_s4 + $0xb0] sm:$0xff] }
0x1271   :  { %3066 = vpow2.f32 %v1572_v50 }
0x1272   :  { %v2890_v61 = vpack.c.bf16 %v3017_v57, %v3016_v58  ;;  %v2442_v58 = vld [vmem:[%s3635_s4 + $0xc0] sm:$0xff] }
0x1274   :  { %2891 = vmatprep.subr.bf16.mxu0 %v2890_v61 }
0x1275   :  { %2893 = vmatpush3.bf16.msra.mxu0 %v2890_v61 }
0x1276   :  { %2903 = vmatprep.subr.bf16.mxu0 %v2902_v48 }
0x127a   :  { %v3065_v52 = vpop.eup %3064 }
0x127b   :  { %v1579_v53 = vsel %vm205_vm1, %v3065_v52, 0.0  ;;  %v3067_v21 = vpop.eup %3066 }
0x127c   :  { %1580 = vadd.xlane.f32.xlu0 %v1579_v53  ;;  %v1576_v25 = vsel %vm205_vm1, %v3067_v21, 0.0  ;;  %v2436_v53 = vld [vmem:[%s3635_s4 + $0x90] sm:$0xff] }
0x1280   :  { %1577 = vadd.xlane.f32.xlu0 %v1576_v25 }
0x1296   :  { %3009 = vrot.lane.b32.xlu0 %v3392_v44, %s3091_s26 }
0x1309   :  { %v1581_v2 = vpop.xlane.xlu0 %1580 }
0x130a   :  { %3068 = vrcp.f32 %v1581_v2  ;;  %v2439_v2 = vld [vmem:[%s3635_s4 + $0xa8] sm:$0xff] }
0x130d   :  { %v1578_v63 = vpop.xlane.xlu0 %1577 }
0x130e   :  { %3070 = vrcp.f32 %v1578_v63  ;;  %v2910_v63 = vpack.c.bf16 %v2439_v2, %v2438_v54 }
0x1311   :  { %v3010_v56 = vpop.permute.xlu0 %3009 }
0x1312   :  { %v3012_v59 = vunpack.i.h.bf16 %v3010_v56  ;;  %v3011_v60 = vunpack.i.l.bf16 %v3010_v56  ;;  %v2441_v56 = vld [vmem:[%s3635_s4 + $0xb8] sm:$0xff] }
0x1313   :  { %v2914_v57 = vpack.c.bf16 %v2441_v56, %v2440_v55 }
0x1314   :  { %v2886_v62 = vpack.c.bf16 %v3012_v59, %v3011_v60  ;;  %v3069_v44 = vpop.eup %3068  ;;  %v2443_v59 = vld [vmem:[%s3635_s4 + $0xc8] sm:$0xff]  ;;  %v2444_v60 = vld [vmem:[%s3635_s4 + $0xd0] sm:$0xff] }
0x1315   :  { %v1585_v0 = vmul.f32 %v3069_v44, %v3065_v52  ;;  %v2918_v61 = vpack.c.bf16 %v2443_v59, %v2442_v58 }
0x1316   :  { %2887 = vmatprep.subr.bf16.mxu1 %v2886_v62 }
0x1317   :  { %2889 = vmatpush3.bf16.msra.mxu1 %v2886_v62  ;;  %v2445_v62 = vld [vmem:[%s3635_s4 + $0xd8] sm:$0xff] }
0x1318   :  { %v3071_v20 = vpop.eup %3070  ;;  %v2922_v44 = vpack.c.bf16 %v2445_v62, %v2444_v60  ;;  %v2063_v62 = vld [vmem:[%s3636_s2 + $0x70] sm:$0xff] }
0x1319   :  { %v1584_v22 = vmul.f32 %v3071_v20, %v3067_v21  ;;  %v2437_v21 = vld [vmem:[%s3635_s4 + $0x98] sm:$0xff]  ;;  %v2446_v20 = vld [vmem:[%s3635_s4 + $0xe0] sm:$0xff] }
0x131a   :  { %v2906_v25 = vpack.c.bf16 %v2437_v21, %v2436_v53  ;;  %v2057_v53 = vld [vmem:[%s3636_s2 + $0x40] sm:$0xff]  ;;  %v2059_v21 = vld [vmem:[%s3636_s2 + $0x50] sm:$0xff] }
0x131b   :  { %2715 = vmatprep.mubr.msk.f32.mxu1 %vm205_vm1, %v1584_v22  ;;  %v2447_v22 = vld [vmem:[%s3635_s4 + $0xe8] sm:$0xff] }
0x131c   :  { %2716 = vmatmul.mubr.msk.f32.vlgmr.msra.gmra.mrb[12].mxu1 %vm205_vm1, %v1585_v0  ;;  %v2926_v0 = vpack.c.bf16 %v2447_v22, %v2446_v20  ;;  %v2064_v20 = vld [vmem:[%s3636_s2 + $0x78] sm:$0xff]  ;;  %v2453_v22 = vld [vmem:[%s3633_s3 + $0x80] sm:$0xff] }
0x13ef   :  { %v2717_v1 = vpop.f32.mrb[12].mxu1 }
0x13f0   :  { %v1664_v3 = vpop.f32.mrb[13].mxu1 }
0x13f1   :  { %2722 = vmatprep.mubr.msk.f32.mxu0 %vm205_vm1, %v1664_v3  ;;  %v2449_v3 = vld [vmem:[%s3635_s4 + $0xf8] sm:$0xff] }
0x13f2   :  { %2723 = vmatmul.mubr.msk.f32.vlgmr.msra.gmra.mrb[10].mxu0 %vm205_vm1, %v2717_v1  ;;  %v2448_v1 = vld [vmem:[%s3635_s4 + $0xf0] sm:$0xff] }
0x13f3   :  { %2905 = vmatpush3.bf16.msra.mxu0 %v2902_v48 }
0x13f4   :  { %2907 = vmatprep.subr.bf16.mxu0 %v2906_v25 }
0x13f7   :  { %2909 = vmatpush3.bf16.msra.mxu0 %v2906_v25  ;;  %v2061_v25 = vld [vmem:[%s3636_s2 + $0x60] sm:$0xff] }
0x13f8   :  { %2911 = vmatprep.subr.bf16.mxu0 %v2910_v63 }
0x13fb   :  { %2913 = vmatpush3.bf16.msra.mxu0 %v2910_v63 }
0x13fc   :  { %2915 = vmatprep.subr.bf16.mxu0 %v2914_v57 }
0x13ff   :  { %2917 = vmatpush3.bf16.msra.mxu0 %v2914_v57 }
0x1400   :  { %2919 = vmatprep.subr.bf16.mxu0 %v2918_v61 }
0x1403   :  { %2921 = vmatpush3.bf16.msra.mxu0 %v2918_v61 }
0x1404   :  { %2923 = vmatprep.subr.bf16.mxu0 %v2922_v44 }
0x1407   :  { %2925 = vmatpush3.bf16.msra.mxu0 %v2922_v44  ;;  %v2062_v44 = vld [vmem:[%s3636_s2 + $0x68] sm:$0xff] }
0x1408   :  { %2927 = vmatprep.subr.bf16.mxu0 %v2926_v0 }
0x140b   :  { %2929 = vmatpush3.bf16.msra.mxu0 %v2926_v0  ;;  %v2454_v0 = vld [vmem:[%s3633_s3 + $0x90] sm:$0xff] }
0x14c5   :  { %v2724_v5 = vpop.f32.mrb[10].mxu0 }
0x14c6   :  { %v2942_v6 = vadd.f32 %v2724_v5, %v2420_v4  ;;  %v1753_v7 = vpop.f32.mrb[11].mxu0  ;;  %v2431_v5 = vld [vmem:[%s3632_s5 + $0x10] ss:$0 sm:$0xff] }
0x14c7   :  { %v2943_v9 = vadd.f32 %v2420_v4, %v1753_v7  ;;  %v2930_v4 = vpack.c.bf16 %v2449_v3, %v2448_v1  ;;  %v2455_v1 = vld [vmem:[%s3633_s3 + $0xa0] sm:$0xff]  ;;  %v3093_v3 = vmov 0.0|0.0  }
0x14c8   :  { %v1765_v10 = vadd.f32 %v2942_v6, %v3382_v38 }
0x14c9   :  { %v1764_v11 = vadd.f32 %v2943_v9, %v3380_v37  ;;  %v2402_v37 = vld [vmem:[%s3633_s3 + $0x48] sm:$0xff]  ;;  %2931 = vmatprep.subr.bf16.mxu0 %v2930_v4 }
0x14ca   :  { %v1771_v46 = vsel %vm27_vm0, %v1765_v10, 0.0  ;;  %v2894_v24 = vpack.c.bf16 %v2404_v23, %v2402_v37  ;;  %2933 = vmatpush3.bf16.msra.mxu0 %v2930_v4  ;;  %v2935_v4 = vpack.c.bf16 %v2454_v0, %v2453_v22 }
0x14cb   :  { %1772 = vadd.xlane.f32.xlu0 %v1771_v46  ;;  %v1768_v47 = vsel %vm27_vm0, %v1764_v11, 0.0 }
0x14cc   :  { %1769 = vadd.xlane.f32.xlu1 %v1768_v47  ;;  %2895 = vmatprep.subr.bf16.mxu1 %v2894_v24 }
0x14cd   :  { %2897 = vmatpush3.bf16.msra.mxu1 %v2894_v24 }
0x14ce   :  { %2899 = vmatprep.subr.bf16.mxu1 %v2898_v28 }
0x14d1   :  { %2901 = vmatpush3.bf16.msra.mxu1 %v2898_v28  ;;  %v3092_v28 = vmov 0  }
0x14d2   :  { %3019 = vset.pattern.permute.xlu1 %v3092_v28  ;;  %3018 = vset.pattern.permute.xlu0 %v3092_v28  ;;  %v2451_v28 = vld [vmem:[%s3632_s5 + $0x12] ss:$0 sm:$0xff] }
0x14d3   :  { %2934 = vmatprep.subr.bf16.mxu1 %v3093_v3 }
0x1558   :  { %v1773_v49 = vpop.xlane.xlu0 %1772 }
0x1559   :  { %v1775_v13 = vmul.f32 0.03125, %v1773_v49  ;;  %v1770_v14 = vpop.xlane.xlu1 %1769 }
0x155a   :  { %v1774_v16 = vmul.f32 0.03125, %v1770_v14 }
0x155b   :  { %v1777_v17 = vsub.f32 %v1765_v10, %v1775_v13 }
0x155c   :  { %v1776_v8 = vsub.f32 %v1764_v11, %v1774_v16 }
0x155d   :  { %v1779_v12 = vmul.f32 %v1777_v17, %v1777_v17 }
0x155e   :  { %v1778_v18 = vmul.f32 %v1776_v8, %v1776_v8 }
0x155f   :  { %v1783_v19 = vsel %vm27_vm0, %v1779_v12, 0.0 }
0x1560   :  { %1784 = vadd.xlane.f32.xlu1 %v1783_v19  ;;  %v1780_v38 = vsel %vm27_vm0, %v1778_v18, 0.0 }
0x1561   :  { %1781 = vadd.xlane.f32.xlu0 %v1780_v38 }
0x15ed   :  { %v1785_v51 = vpop.xlane.xlu1 %1784 }
0x15ee   :  { %v1787_v31 = vmul.f32 0.03125, %v1785_v51  ;;  %v1782_v32 = vpop.xlane.xlu0 %1781 }
0x15ef   :  { %v1786_v33 = vmul.f32 0.03125, %v1782_v32 }
0x15f0   :  { %v1789_v34 = vadd.f32 1e-12, %v1787_v31 }
0x15f1   :  { %v1788_v35 = vadd.f32 1e-12, %v1786_v33 }
0x15f2   :  { %3072 = vrsqrt.f32 %v1789_v34 }
0x15f3   :  { %3074 = vrsqrt.f32 %v1788_v35 }
0x15fc   :  { %v3073_v36 = vpop.eup %3072 }
0x15fd   :  { %v3075_v40 = vpop.eup %3074  ;;  %v1793_v15 = vmul.f32 %v3073_v36, %v1777_v17  ;;  %v2050_v36 = vld [vmem:[%s3636_s2 + $0x8] sm:$0xff] }
0x15fe   :  { %v1792_v41 = vmul.f32 %v3075_v40, %v1776_v8  ;;  %v2049_v40 = vld [vmem:[%s3636_s2] sm:$0xff] }
0x15ff   :  { %v1799_v43 = vmul.f32 %v2429_v39, %v1793_v15  ;;  %v2052_v15 = vld [vmem:[%s3636_s2 + $0x18] sm:$0xff] }
0x1600   :  { %v1798_v45 = vmul.f32 %v2429_v39, %v1792_v41  ;;  %v2051_v39 = vld [vmem:[%s3636_s2 + $0x10] sm:$0xff]  ;;  %v2058_v41 = vld [vmem:[%s3636_s2 + $0x48] sm:$0xff] }
0x1601   :  { %v3474_v52 = vadd.f32 %v2430_v42, %v1799_v43  ;;  %v2060_v43 = vld [vmem:[%s3636_s2 + $0x58] sm:$0xff] }
0x1602   :  { %v3472_v50 = vadd.f32 %v2430_v42, %v1798_v45  ;;  %v2053_v42 = vld [vmem:[%s3636_s2 + $0x20] sm:$0xff]  ;;  %v2054_v45 = vld [vmem:[%s3636_s2 + $0x28] sm:$0xff] }
0x1604   :  { %2733 = vmatprep.mubr.msk.f32.mxu1 %vm27_vm0, %v3472_v50 }
0x1605   :  { %2734 = vmatmul.mubr.msk.f32.vlgmr.msra.gmra.mrb[14].mxu1 %vm27_vm0, %v3474_v52 }
0x1606   :  { %2936 = vmatpush3.bf16.msra.mxu1 %v2935_v4 }
0x1607   :  { %2937 = vmatprep.subr.bf16.mxu1 %v3093_v3 }
0x16d8   :  { %v2735_v6 = vpop.f32.mrb[14].mxu1 }
0x16d9   :  { %v1889_v7 = vadd.f32 %v2735_v6, %v2431_v5  ;;  %v1883_v9 = vpop.f32.mrb[15].mxu1  ;;  %v3095_v6 = vmov 0.0  }
0x16da   :  { %v1884_v10 = vadd.f32 %v2431_v5, %v1883_v9  ;;  %v2456_v5 = vld [vmem:[%s3633_s3 + $0xb0] sm:$0xff]  ;;  %2779 = vmatprep.mubr.msk.f32.mxu1 %vm3094_vm3, %v3095_v6  ;;  %vm2279_vm3 = vcmask 1047559  }
0x16db   :  { %v1895_v11 = vmul.f32 0.044715, %v1889_v7  ;;  %v1893_v24 = vmul.f32 0.5, %v1889_v7 }
0x16dc   :  { %v1894_v46 = vmul.f32 0.044715, %v1884_v10  ;;  %v1892_v37 = vmul.f32 0.5, %v1884_v10 }
0x16dd   :  { %v1897_v47 = vmul.f32 %v1895_v11, %v1889_v7 }
0x16de   :  { %v1896_v49 = vmul.f32 %v1894_v46, %v1884_v10 }
0x16df   :  { %v1899_v13 = vmul.f32 %v1897_v47, %v1889_v7 }
0x16e0   :  { %v1898_v14 = vmul.f32 %v1896_v49, %v1884_v10 }
0x16e1   :  { %v1901_v16 = vadd.f32 %v1899_v13, %v1889_v7  ;;  %v2938_v7 = vpack.c.bf16 %v2456_v5, %v2455_v1 }
0x16e2   :  { %v1900_v17 = vadd.f32 %v1898_v14, %v1884_v10 }
0x16e3   :  { %v1903_v8 = vmul.f32 0.7978846, %v1901_v16  ;;  %2939 = vmatpush3.bf16.msra.mxu1 %v2938_v7 }
0x16e4   :  { %v1902_v12 = vmul.f32 0.7978846, %v1900_v17 }
0x16e5   :  { %3076 = vtanh.f32 %v1903_v8 }
0x16e6   :  { %3078 = vtanh.f32 %v1902_v12 }
0x16ef   :  { %v3077_v18 = vpop.eup %3076 }
0x16f0   :  { %v3079_v19 = vpop.eup %3078  ;;  %v1907_v38 = vadd.f32 1.0, %v3077_v18 }
0x16f1   :  { %v1906_v23 = vadd.f32 1.0, %v3079_v19 }
0x16f2   :  { %v1909_v27 = vmul.f32 %v1907_v38, %v1893_v24 }
0x16f3   :  { %v1908_v26 = vmul.f32 %v1906_v23, %v1892_v37 }
0x16f5   :  { %2768 = vmatprep.mubr.f32.mxu0 %v1908_v26 }
0x16f6   :  { %2769 = vmatmul.mubr.f32.vlgmr.msra.gmra.mrb[14].mxu0 %v1909_v27 }
0x17c9   :  { %v2770_v30 = vpop.f32.mrb[14].mxu0 }
0x17ca   :  { %v2004_v48 = vadd.f32 %v2770_v30, %v2450_v29  ;;  %v1998_v51 = vpop.f32.mrb[15].mxu0 }
0x17cb   :  { %v1999_v31 = vadd.f32 %v2450_v29, %v1998_v51  ;;  %v2452_v51 = vld [vmem:[%s3632_s5 + $0x13] ss:$0 sm:$0xff] }
0x17cc   :  { %v2008_v32 = vadd.f32 %v2004_v48, %v3474_v52  ;;  %v2056_v52 = vld [vmem:[%s3636_s2 + $0x38] sm:$0xff] }
0x17cd   :  { %v2007_v33 = vadd.f32 %v1999_v31, %v3472_v50  ;;  %v2055_v50 = vld [vmem:[%s3636_s2 + $0x30] sm:$0xff] }
0x17ce   :  { %v2014_v34 = vsel %vm27_vm0, %v2008_v32, 0.0 }
0x17cf   :  { %2015 = vadd.xlane.f32.xlu1 %v2014_v34  ;;  %v2011_v35 = vsel %vm27_vm0, %v2007_v33, 0.0 }
0x17d0   :  { %2012 = vadd.xlane.f32.xlu0 %v2011_v35 }
0x17e0   :  { %2072 = vperm.xlu1 %3019, %v2050_v36  }
0x17e4   :  { %2077 = vperm.xlu1 %3019, %v2051_v39  }
0x17e6   :  { %2067 = vperm.xlu0 %3018, %v2049_v40  }
0x17e8   :  { %2082 = vperm.xlu1 %3019, %v2052_v15  }
0x17ea   :  { %2112 = vperm.xlu0 %3018, %v2058_v41  }
0x17ec   :  { %2087 = vperm.xlu1 %3019, %v2053_v42  }
0x17ee   :  { %2122 = vperm.xlu0 %3018, %v2060_v43  }
0x17f0   :  { %2092 = vperm.xlu1 %3019, %v2054_v45  }
0x17f4   :  { %2097 = vperm.xlu1 %3019, %v2055_v50  }
0x17f8   :  { %2102 = vperm.xlu1 %3019, %v2056_v52  }
0x17fc   :  { %2107 = vperm.xlu1 %3019, %v2057_v53  }
0x1800   :  { %2117 = vperm.xlu1 %3019, %v2059_v21  }
0x1804   :  { %2127 = vperm.xlu1 %3019, %v2061_v25  }
0x185c   :  { %v2016_v54 = vpop.xlane.xlu1 %2015 }
0x185d   :  { %v2018_v2 = vmul.f32 0.03125, %v2016_v54  ;;  %v2013_v63 = vpop.xlane.xlu0 %2012 }
0x185e   :  { %v2017_v55 = vmul.f32 0.03125, %v2013_v63 }
0x185f   :  { %v2020_v56 = vsub.f32 %v2008_v32, %v2018_v2 }
0x1860   :  { %v2019_v57 = vsub.f32 %v2007_v33, %v2017_v55  ;;  %v2073_v9 = vpop.permute.xlu1 %2072 }
0x1861   :  { %v2022_v58 = vmul.f32 %v2020_v56, %v2020_v56 }
0x1862   :  { %v2021_v59 = vmul.f32 %v2019_v57, %v2019_v57 }
0x1863   :  { %v2026_v60 = vsel %vm27_vm0, %v2022_v58, 0.0 }
0x1864   :  { %2027 = vadd.xlane.f32.xlu1 %v2026_v60  ;;  %v2023_v61 = vsel %vm27_vm0, %v2021_v59, 0.0  ;;  %v2078_v10 = vpop.permute.xlu1 %2077 }
0x1865   :  { %2024 = vadd.xlane.f32.xlu0 %v2023_v61  ;;  %v2068_v16 = vpop.permute.xlu0 %2067 }
0x1868   :  { %v2083_v11 = vpop.permute.xlu1 %2082 }
0x1869   :  { %v2113_v8 = vpop.permute.xlu0 %2112 }
0x186c   :  { %v2088_v46 = vpop.permute.xlu1 %2087 }
0x186d   :  { %v2123_v18 = vpop.permute.xlu0 %2122 }
0x1870   :  { %v2093_v47 = vpop.permute.xlu1 %2092 }
0x1874   :  { %v2098_v49 = vpop.permute.xlu1 %2097 }
0x1875   :  { %2137 = vperm.xlu1 %3019, %v2063_v62  }
0x1878   :  { %v2103_v13 = vpop.permute.xlu1 %2102 }
0x187b   :  { %2132 = vperm.xlu0 %3018, %v2062_v44  }
0x187c   :  { %v2108_v14 = vpop.permute.xlu1 %2107 }
0x187f   :  { %2142 = vperm.xlu0 %3018, %v2064_v20  }
0x1880   :  { %v2118_v17 = vpop.permute.xlu1 %2117 }
0x1884   :  { %v2128_v12 = vpop.permute.xlu1 %2127 }
0x18f1   :  { %v2028_v19 = vpop.xlane.xlu1 %2027 }
0x18f2   :  { %v2030_v38 = vmul.f32 0.03125, %v2028_v19  ;;  %v2025_v37 = vpop.xlane.xlu0 %2024 }
0x18f3   :  { %v2029_v23 = vmul.f32 0.03125, %v2025_v37 }
0x18f4   :  { %v2032_v24 = vadd.f32 1e-12, %v2030_v38 }
0x18f5   :  { %v2031_v26 = vadd.f32 1e-12, %v2029_v23  ;;  %v2138_v39 = vpop.permute.xlu1 %2137 }
0x18f6   :  { %3080 = vrsqrt.f32 %v2032_v24 }
0x18f7   :  { %3082 = vrsqrt.f32 %v2031_v26 }
0x18fa   :  { %v2133_v29 = vpop.permute.xlu0 %2132 }
0x18fe   :  { %v2143_v36 = vpop.permute.xlu0 %2142 }
0x1900   :  { %v3081_v27 = vpop.eup %3080 }
0x1901   :  { %v3083_v30 = vpop.eup %3082  ;;  %v2036_v48 = vmul.f32 %v3081_v27, %v2020_v56 }
0x1902   :  { %v2035_v31 = vmul.f32 %v3083_v30, %v2019_v57 }
0x1903   :  { %v2042_v32 = vmul.f32 %v2451_v28, %v2036_v48 }
0x1904   :  { %v2041_v33 = vmul.f32 %v2451_v28, %v2035_v31 }
0x1905   :  { %v2048_v34 = vadd.f32 %v2452_v51, %v2042_v32 }
0x1906   :  { %v2047_v35 = vadd.f32 %v2452_v51, %v2041_v33 }
0x1907   :  { %v2158_v40 = vadd.f32 %v2133_v29, %v2048_v34  ;;  %v2160_v15 = vadd.f32 %v2143_v36, %v2048_v34  ;;  %v2146_v41 = vadd.f32 %v2073_v9, %v2048_v34  ;;  %v2148_v42 = vadd.f32 %v2083_v11, %v2048_v34 }
0x1908   :  { %v2159_v43 = vadd.f32 %v2138_v39, %v2047_v35  ;;  %v2157_v45 = vadd.f32 %v2128_v12, %v2047_v35  ;;  %v2145_v50 = vadd.f32 %v2068_v16, %v2047_v35  ;;  %v2147_v52 = vadd.f32 %v2078_v10, %v2047_v35 }
0x1909   :  { %v2216_v53 = vsel %vm27_vm0, %v2158_v40, -inf  ;;  %v2225_v21 = vsel %vm27_vm0, %v2160_v15, -inf  ;;  %v2149_v25 = vadd.f32 %v2088_v46, %v2047_v35  ;;  %v2150_v54 = vadd.f32 %v2093_v47, %v2048_v34 }
0x190a   :  { %v2224_v2 = vsel %vm27_vm0, %v2159_v43, -inf  ;;  %v2215_v63 = vsel %vm27_vm0, %v2157_v45, -inf  ;;  %v2151_v55 = vadd.f32 %v2098_v49, %v2047_v35  ;;  %v2152_v56 = vadd.f32 %v2103_v13, %v2048_v34 }
0x190b   :  { %v2217_v57 = vmax.f32 %v2215_v63, %v2216_v53  ;;  %v2226_v58 = vmax.f32 %v2224_v2, %v2225_v21  ;;  %v2153_v59 = vadd.f32 %v2108_v14, %v2047_v35  ;;  %v2154_v60 = vadd.f32 %v2113_v8, %v2048_v34 }
0x190c   :  { %v2155_v61 = vadd.f32 %v2118_v17, %v2047_v35  ;;  %v2156_v62 = vadd.f32 %v2123_v18, %v2048_v34  ;;  %v2161_v44 = vsel %vm27_vm0, %v2145_v50, -inf  ;;  %v2162_v20 = vsel %vm27_vm0, %v2146_v41, -inf }
0x190d   :  { %v2218_v22 = vrot.slane %v2217_v57, 4  ;;  %v2227_v0 = vrot.slane %v2226_v58, 4  ;;  %v2163_v1 = vmax.f32 %v2161_v44, %v2162_v20  ;;  %v2170_v3 = vsel %vm27_vm0, %v2147_v52, -inf }
0x190e   :  { %v2171_v4 = vsel %vm27_vm0, %v2148_v42, -inf  ;;  %v2179_v5 = vsel %vm27_vm0, %v2149_v25, -inf  ;;  %v2180_v6 = vsel %vm27_vm0, %v2150_v54, -inf  ;;  %v2188_v7 = vsel %vm27_vm0, %v2151_v55, -inf }
0x190f   :  { %v2219_v9 = vmax.f32 %v2217_v57, %v2218_v22  ;;  %v2228_v10 = vmax.f32 %v2226_v58, %v2227_v0  ;;  %v2164_v11 = vrot.slane %v2163_v1, 4  ;;  %v2172_v46 = vmax.f32 %v2170_v3, %v2171_v4 }
0x1910   :  { %v2181_v47 = vmax.f32 %v2179_v5, %v2180_v6  ;;  %v2189_v49 = vsel %vm27_vm0, %v2152_v56, -inf  ;;  %v2197_v13 = vsel %vm27_vm0, %v2153_v59, -inf  ;;  %v2198_v14 = vsel %vm27_vm0, %v2154_v60, -inf }
0x1911   :  { %v2165_v16 = vmax.f32 %v2163_v1, %v2164_v11  ;;  %v2173_v17 = vrot.slane %v2172_v46, 4  ;;  %v2220_v8 = vrot.slane %v2219_v9, 2  ;;  %v2190_v18 = vmax.f32 %v2188_v7, %v2189_v49 }
0x1912   :  { %v2182_v12 = vrot.slane %v2181_v47, 4  ;;  %v2199_v19 = vmax.f32 %v2197_v13, %v2198_v14  ;;  %v2229_v38 = vrot.slane %v2228_v10, 2  ;;  %v2206_v24 = vsel %vm27_vm0, %v2155_v61, -inf  ;;  %v2457_v14 = vld [vmem:[%s3632_s5 + $0x2] ss:$0 sm:$0xff] }
0x1913   :  { %v2166_v37 = vrot.slane %v2165_v16, 2  ;;  %v2174_v23 = vmax.f32 %v2172_v46, %v2173_v17  ;;  %v2191_v27 = vrot.slane %v2190_v18, 4  ;;  %v2207_v29 = vsel %vm27_vm0, %v2156_v62, -inf }
0x1914   :  { %v2183_v26 = vmax.f32 %v2181_v47, %v2182_v12  ;;  %v2200_v28 = vrot.slane %v2199_v19, 4  ;;  %v2208_v33 = vmax.f32 %v2206_v24, %v2207_v29  ;;  %v2221_v34 = vmax.f32 %v2219_v9, %v2220_v8  ;;  %v2459_v12 = vld [vmem:[%s3632_s5 + $0x3] ss:$0 sm:$0xff] }
0x1915   :  { %v2167_v30 = vmax.f32 %v2165_v16, %v2166_v37  ;;  %v2175_v48 = vrot.slane %v2174_v23, 2  ;;  %v2192_v31 = vmax.f32 %v2190_v18, %v2191_v27  ;;  %v2230_v35 = vmax.f32 %v2228_v10, %v2229_v38 }
0x1916   :  { %v2184_v51 = vrot.slane %v2183_v26, 2  ;;  %v2201_v32 = vmax.f32 %v2199_v19, %v2200_v28  ;;  %v2209_v42 = vrot.slane %v2208_v33, 4  ;;  %v2222_v25 = vrot.slane %v2221_v34, 1 }
0x1917   :  { %v2168_v36 = vrot.slane %v2167_v30, 1  ;;  %v2176_v39 = vmax.f32 %v2174_v23, %v2175_v48  ;;  %v2193_v15 = vrot.slane %v2192_v31, 2  ;;  %v2231_v54 = vrot.slane %v2230_v35, 1 }
0x1918   :  { %v2185_v40 = vmax.f32 %v2183_v26, %v2184_v51  ;;  %v2202_v41 = vrot.slane %v2201_v32, 2  ;;  %v2210_v21 = vmax.f32 %v2208_v33, %v2209_v42  ;;  %v2223_v62 = vmax.f32 %v2221_v34, %v2222_v25 }
0x1919   :  { %v2169_v43 = vmax.f32 %v2167_v30, %v2168_v36  ;;  %v2177_v45 = vrot.slane %v2176_v39, 1  ;;  %v2194_v52 = vmax.f32 %v2192_v31, %v2193_v15  ;;  %v2232_v44 = vmax.f32 %v2230_v35, %v2231_v54 }
0x191a   :  { %v2186_v50 = vrot.slane %v2185_v40, 1  ;;  %v2203_v53 = vmax.f32 %v2201_v32, %v2202_v41  ;;  %v2211_v57 = vrot.slane %v2210_v21, 2  ;;  %vm2239_vm13 = vcmp.gt.f32.partialorder %v2223_v62, -1e+29 }
0x191b   :  { %v2178_v2 = vmax.f32 %v2176_v39, %v2177_v45  ;;  %vm2233_vm6 = vcmp.gt.f32.partialorder %v2169_v43, -1e+29  ;;  %v2195_v55 = vrot.slane %v2194_v52, 1  ;;  %vm2240_vm1 = vcmp.gt.f32.partialorder %v2232_v44, -1e+29 }
0x191c   :  { %v2187_v63 = vmax.f32 %v2185_v40, %v2186_v50  ;;  %v2204_v56 = vrot.slane %v2203_v53, 1  ;;  %v2241_v58 = vsel %vm2233_vm6, %v2169_v43, 0.0  ;;  %v2212_v61 = vmax.f32 %v2210_v21, %v2211_v57 }
0x191d   :  { %vm2234_vm7 = vcmp.gt.f32.partialorder %v2178_v2, -1e+29  ;;  %v2196_v59 = vmax.f32 %v2194_v52, %v2195_v55  ;;  %v2247_v11 = vsel %vm2239_vm13, %v2223_v62, 0.0  ;;  %v2248_v47 = vsel %vm2240_vm1, %v2232_v44, 0.0 }
0x191e   :  { %v2205_v60 = vmax.f32 %v2203_v53, %v2204_v56  ;;  %vm2235_vm10 = vcmp.gt.f32.partialorder %v2187_v63, -1e+29  ;;  %v2242_v20 = vsel %vm2234_vm7, %v2178_v2, 0.0  ;;  %v2213_v0 = vrot.slane %v2212_v61, 1 }
0x191f   :  { %v2243_v22 = vsel %vm2235_vm10, %v2187_v63, 0.0  ;;  %vm2236_vm11 = vcmp.gt.f32.partialorder %v2196_v59, -1e+29  ;;  %v2268_v1 = vsel %vm2267_vm4, %v2242_v20, %v2241_v58  ;;  %vm2363_vm4 = vcmask 7168  }
0x1920   :  { %vm2237_vm12 = vcmp.gt.f32.partialorder %v2205_v60, -1e+29  ;;  %v2244_v3 = vsel %vm2236_vm11, %v2196_v59, 0.0  ;;  %v2270_v4 = vsel %vm2269_vm5, %v2243_v22, %v2268_v1  ;;  %v2214_v5 = vmax.f32 %v2212_v61, %v2213_v0 }
0x1921   :  { %v2245_v6 = vsel %vm2237_vm12, %v2205_v60, 0.0  ;;  %v2272_v7 = vsel %vm2271_vm8, %v2244_v3, %v2270_v4 }
0x1922   :  { %v2274_v9 = vsel %vm2273_vm9, %v2245_v6, %v2272_v7  ;;  %vm2238_vm15 = vcmp.gt.f32.partialorder %v2214_v5, -1e+29 }
0x1923   :  { %v2246_v10 = vsel %vm2238_vm15, %v2214_v5, 0.0 }
0x1924   :  { %v2276_v46 = vsel %vm2275_vm14, %v2246_v10, %v2274_v9 }
0x1925   :  { %v2278_v49 = vsel %vm2277_vm2, %v2247_v11, %v2276_v46 }
0x1926   :  { %v2280_v13 = vsel %vm2279_vm3, %v2248_v47, %v2278_v49 }
0x1927   :  { %2780 = vmatmul.mubr.msk.f32.vlgmr.msra.gmra.mrb[16].mxu1 %vm27_vm0, %v2280_v13 }
0x19fa   :  { %v2349_v16 = vpop.f32.mrb[16].mxu1 }
0x19fb   :  { %v2350_v17 = vadd.f32 %v2457_v14, %v2349_v16  ;;  %v2781_v8 = vpop.f32.mrb[17].mxu1 }
0x19fd   :  { %3084 = vtanh.f32 %v2350_v17 }
0x1a07   :  { %v3085_v18 = vpop.eup %3084 }
0x1a08   :  { %v2359_v19 = vmul.f32 %v3085_v18, %v2459_v12 }
0x1a0a   :  { %v2360_v38 = vsel %vm27_vm0, %v2359_v19, 0.0 }
0x1a0b   :  { %2361 = vadd.xlane.f32.xlu1 %v2360_v38 }
0x1a98   :  { %v2362_v37 = vpop.xlane.xlu1 %2361 }
0x1a99   :  { %2364 = vst.msk [vmem:[%s3637_s6] sm:$0xff] %vm2363_vm4, %v2362_v37 }

</bundles_post_ra>
